<compile_context>
chip_gen: v6e
topology: v6e:2x2x1
jax: 0.10.0
libtpu: 0.0.40
codegen_flags: <defaults>
</compile_context>

<pallas_src>
import functools

import jax
import jax.numpy as jnp
import numpy as np
from jax.experimental import pallas as pl
from jax.experimental.pallas import tpu as pltpu


# ----------------------------------------------------------------------------
# Fused kernel: streamed x chunk -> gates -> recurrence; FC on the last step.
# ----------------------------------------------------------------------------
def lstm_fused_kernel(x_ref, h0_ref, c0_ref, wih_ref, whh_ref, b_ref,
                      wfc_ref, bfc_ref,
                      out_ref, hn_ref, cn_ref,
                      h_sc, c_sc):
    step = pl.program_id(0)
    n_steps = pl.num_programs(0)
    TT = x_ref.shape[1]          # time steps in this chunk (static)
    H = h_sc.shape[1]            # padded hidden size (lane multiple of 128)

    # Initialize recurrent state from (h0, c0) on the first grid step.
    @pl.when(step == 0)
    def _():
        h_sc[...] = h0_ref[...].astype(jnp.float32)
        c_sc[...] = c0_ref[...].astype(jnp.float32)

    h = h_sc[...]
    c = c_sc[...]
    wih = wih_ref[...]
    whh = whh_ref[...]
    bias = b_ref[...]
    cdt = whh_ref.dtype          # matmul operand dtype (f32 or bf16)

    # Statically unrolled inner loop over the chunk (TT is a trace-time constant and
    # capped small so vreg live ranges stay bounded). x_t is sliced from the VMEM ref
    # per step; both matmuls accumulate in f32 on the MXU; gate math / state stay f32.
    for tt in range(TT):
        x_t = x_ref[:, tt, :].astype(cdt)                       # (B, I)
        gates = (jnp.dot(x_t, wih, preferred_element_type=jnp.float32)
                 + jnp.dot(h.astype(cdt), whh, preferred_element_type=jnp.float32)
                 + bias)
        i_g = jax.nn.sigmoid(gates[:, 0 * H:1 * H])
        f_g = jax.nn.sigmoid(gates[:, 1 * H:2 * H])
        g_g = jnp.tanh(gates[:, 2 * H:3 * H])
        o_g = jax.nn.sigmoid(gates[:, 3 * H:4 * H])
        c = f_g * c + i_g * g_g
        h = o_g * jnp.tanh(c)

    h_sc[...] = h
    c_sc[...] = c

    # Only the last grid step computes the FC projection and writes the outputs.
    @pl.when(step == n_steps - 1)
    def _():
        hn_ref[...] = h.astype(hn_ref.dtype)
        cn_ref[...] = c.astype(cn_ref.dtype)
        out_ref[...] = (
            jnp.dot(h, wfc_ref[...], preferred_element_type=jnp.float32)
            + bfc_ref[...]
        ).astype(out_ref.dtype)


# ----------------------------------------------------------------------------
# Helpers
# ----------------------------------------------------------------------------
def _round_up(n, m):
    return ((n + m - 1) // m) * m


def _pad_gate_cols(w, H, Hp):
    """Pad a (..., 4H) gate-blocked matrix to (..., 4Hp), each gate block separately."""
    if Hp == H:
        return w
    pad = [(0, 0)] * (w.ndim - 1) + [(0, Hp - H)]
    parts = [jnp.pad(w[..., k * H:(k + 1) * H], pad) for k in range(4)]
    return jnp.concatenate(parts, axis=-1)


def _vmem_limit_bytes():
    """Explicit scoped-VMEM limit: ~3/4 of physical capacity, capped at 100 MiB."""
    try:
        cap = pltpu.get_tpu_info().vmem_capacity_bytes
    except Exception:
        cap = 128 << 20
    return int(min(cap * 3 // 4, 100 << 20))


def _pick_time_chunk(T, Bp, I, Hp, Op, vmem_limit, max_chunk=16):
    """Largest divisor of T fitting the VMEM budget (max_chunk bounds static unroll)."""
    f32 = 4
    resident = f32 * (I * 4 * Hp + Hp * 4 * Hp + 4 * Hp      # W_ih, W_hh, b
                      + Hp * Op + Op                          # W_fc, b_fc
                      + 6 * Bp * Hp + 2 * Bp * Op)            # h0/c0/scratch/outputs
    budget = vmem_limit - resident - (2 << 20)                # headroom for internals
    per_t = 2 * Bp * I * f32                                  # double-buffered x chunk
    cap = max(1, budget // max(per_t, 1))
    cap = int(min(cap, max_chunk, T))
    for tt in range(cap, 0, -1):
        if T % tt == 0:
            return tt
    return 1


def _const_spec(shape):
    """BlockSpec for a constant-index (grid-invariant) operand, single-buffered."""
    index_map = lambda s: (0,) * len(shape)
    try:
        return pl.BlockSpec(shape, index_map, pipeline_mode=pl.Buffered(1))
    except (TypeError, AttributeError):
        return pl.BlockSpec(shape, index_map)


# ----------------------------------------------------------------------------
# Wrapper
# ----------------------------------------------------------------------------
@functools.partial(jax.jit, static_argnames=("matmul_dtype",))
def lstm_model_forward(x, h0, c0, w_ih, w_hh, b, w_fc, b_fc,
                       matmul_dtype=jnp.float32):
    """x: (B, T, I). Returns (out (B, O), (h_n (1,B,H), c_n (1,B,H)))."""
    B, T, I = x.shape
    H = h0.shape[1]
    O = w_fc.shape[1]

    # Pad batch to sublane (8) and hidden/output widths to lane (128) multiples.
    Bp = _round_up(B, 8)
    Hp = _round_up(H, 128)
    Op = _round_up(O, 128)

    w_ih_p = _pad_gate_cols(w_ih, H, Hp).astype(matmul_dtype)            # (I, 4Hp)
    w_hh_p = jnp.pad(_pad_gate_cols(w_hh, H, Hp),
                     ((0, Hp - H), (0, 0))).astype(matmul_dtype)         # (Hp, 4Hp)
    b_p = _pad_gate_cols(b, H, Hp)                                       # (1, 4Hp) f32
    w_fc_p = jnp.pad(w_fc, ((0, Hp - H), (0, Op - O)))                   # (Hp, Op)
    b_fc_p = jnp.pad(b_fc, ((0, 0), (0, Op - O)))                        # (1, Op)
    h0_p = jnp.pad(h0, ((0, Bp - B), (0, Hp - H)))                       # (Bp, Hp)
    c0_p = jnp.pad(c0, ((0, Bp - B), (0, Hp - H)))                       # (Bp, Hp)
    x_p = jnp.pad(x, ((0, Bp - B), (0, 0), (0, 0)))                      # (Bp, T, I)

    vmem_limit = _vmem_limit_bytes()
    TT = _pick_time_chunk(T, Bp, I, Hp, Op, vmem_limit)

    out_p, hn_p, cn_p = pl.pallas_call(
        lstm_fused_kernel,
        out_shape=(
            jax.ShapeDtypeStruct((Bp, Op), x.dtype),
            jax.ShapeDtypeStruct((Bp, Hp), x.dtype),
            jax.ShapeDtypeStruct((Bp, Hp), x.dtype),
        ),
        grid_spec=pltpu.PrefetchScalarGridSpec(
            num_scalar_prefetch=0,
            grid=(T // TT,),
            in_specs=[
                # x time-chunk, native (B, T, I) layout, default double-buffered.
                pl.BlockSpec((Bp, TT, I), lambda s: (0, s, 0)),
                _const_spec((Bp, Hp)),        # h0
                _const_spec((Bp, Hp)),        # c0
                _const_spec((I, 4 * Hp)),     # w_ih
                _const_spec((Hp, 4 * Hp)),    # w_hh
                _const_spec((1, 4 * Hp)),     # b = b_ih + b_hh
                _const_spec((Hp, Op)),        # w_fc
                _const_spec((1, Op)),         # b_fc
            ],
            out_specs=[
                pl.BlockSpec((Bp, Op), lambda s: (0, 0)),
                pl.BlockSpec((Bp, Hp), lambda s: (0, 0)),
                pl.BlockSpec((Bp, Hp), lambda s: (0, 0)),
            ],
            scratch_shapes=[
                pltpu.VMEM((Bp, Hp), jnp.float32),  # h state (persists across steps)
                pltpu.VMEM((Bp, Hp), jnp.float32),  # c state
            ],
        ),
        compiler_params=pltpu.CompilerParams(
            dimension_semantics=("arbitrary",),     # time recurrence is serial
            vmem_limit_bytes=vmem_limit,
        ),
    )(x_p, h0_p, c0_p, w_ih_p, w_hh_p, b_p, w_fc_p, b_fc_p)

    out = out_p[:B, :O]
    hn = hn_p[:B, :H]
    cn = cn_p[:B, :H]
    return out, (hn[None, ...], cn[None, ...])


# ----------------------------------------------------------------------------
# Pure-JAX reference (PyTorch nn.LSTM + nn.Linear semantics)
# ----------------------------------------------------------------------------
def lstm_model_reference(x, h0, c0, w_ih, w_hh, b, w_fc, b_fc):
    H = h0.shape[1]

    def step(carry, x_t):
        h, c = carry
        gates = x_t @ w_ih + h @ w_hh + b
        i_g = jax.nn.sigmoid(gates[:, 0 * H:1 * H])
        f_g = jax.nn.sigmoid(gates[:, 1 * H:2 * H])
        g_g = jnp.tanh(gates[:, 2 * H:3 * H])
        o_g = jax.nn.sigmoid(gates[:, 3 * H:4 * H])
        c_new = f_g * c + i_g * g_g
        h_new = o_g * jnp.tanh(c_new)
        return (h_new, c_new), h_new

    (h_n, c_n), _ = jax.lax.scan(step, (h0, c0), jnp.transpose(x, (1, 0, 2)))
    out = h_n @ w_fc + b_fc
    return out, (h_n[None, ...], c_n[None, ...])


if __name__ == "__main__":
    B, T = 4, 8
    input_size, hidden_size, output_size = 16, 32, 8

    key = jax.random.PRNGKey(0)
    keys = jax.random.split(key, 8)
    bound = 1.0 / np.sqrt(hidden_size)  # PyTorch default LSTM/Linear init scale

    # Parameters (stored transposed relative to PyTorch layout; gate order i,f,g,o).
    w_ih = jax.random.uniform(keys[0], (input_size, 4 * hidden_size),
                              jnp.float32, -bound, bound)
    w_hh = jax.random.uniform(keys[1], (hidden_size, 4 * hidden_size),
                              jnp.float32, -bound, bound)
    b_ih = jax.random.uniform(keys[2], (1, 4 * hidden_size), jnp.float32, -bound, bound)
    b_hh = jax.random.uniform(keys[3], (1, 4 * hidden_size), jnp.float32, -bound, bound)
    b = b_ih + b_hh
    w_fc = jax.random.uniform(keys[4], (hidden_size, output_size),
                              jnp.float32, -bound, bound)
    b_fc = jax.random.uniform(keys[5], (1, output_size), jnp.float32, -bound, bound)

    # Input and initial hidden state (hidden=None path -> zeros).
    x = jax.random.normal(keys[6], (B, T, input_size), jnp.float32)
    h0 = jnp.zeros((B, hidden_size), jnp.float32)
    c0 = jnp.zeros((B, hidden_size), jnp.float32)

    out, (h_n, c_n) = lstm_model_forward(x, h0, c0, w_ih, w_hh, b, w_fc, b_fc)
    jax.block_until_ready((out, h_n, c_n))

    # Verify against pure-JAX reference (f32 path; loosen tolerance if using bf16 weights).
    out_ref, (h_ref, c_ref) = lstm_model_reference(x, h0, c0, w_ih, w_hh, b, w_fc, b_fc)
    np.testing.assert_allclose(np.asarray(out), np.asarray(out_ref), rtol=1e-5, atol=1e-5)
    np.testing.assert_allclose(np.asarray(h_n), np.asarray(h_ref), rtol=1e-5, atol=1e-5)
    np.testing.assert_allclose(np.asarray(c_n), np.asarray(c_ref), rtol=1e-5, atol=1e-5)

    # last_hidden_state equivalent (host-side numpy, like the module attribute):
    last_hidden_state = np.asarray(h_n[0])  # (B, hidden_size)

    print("KERNEL_OK")
</pallas_src>

<mosaic_0001>
module attributes {stable_mosaic.version = 11 : i64} {
  func.func @lstm_fused_kernel(%arg0: i32, %arg1: memref<8x8x16xf32, #tpu.memory_space<vmem>>, %arg2: memref<8x128xf32, #tpu.memory_space<vmem>>, %arg3: memref<8x128xf32, #tpu.memory_space<vmem>>, %arg4: memref<16x512xf32, #tpu.memory_space<vmem>>, %arg5: memref<128x512xf32, #tpu.memory_space<vmem>>, %arg6: memref<1x512xf32, #tpu.memory_space<vmem>>, %arg7: memref<128x128xf32, #tpu.memory_space<vmem>>, %arg8: memref<1x128xf32, #tpu.memory_space<vmem>>, %arg9: memref<8x128xf32, #tpu.memory_space<vmem>>, %arg10: memref<8x128xf32, #tpu.memory_space<vmem>>, %arg11: memref<8x128xf32, #tpu.memory_space<vmem>>, %arg12: memref<8x128xf32, #tpu.memory_space<vmem>>, %arg13: memref<8x128xf32, #tpu.memory_space<vmem>>) attributes {dimension_semantics = [#tpu.dimension_semantics<arbitrary>], iteration_bounds = array<i64: 1>, scalar_prefetch = 0 : i64, scratch_operands = 2 : i64, tpu.core_type = #tpu.core_type<tc>, window_params = [{transform_indices = @transform_0, window_bounds = array<i64: 8, 8, 16>}, {pipeline_mode = #tpu.pipeline_mode<synchronous>, transform_indices = @transform_1, window_bounds = array<i64: 8, 128>}, {pipeline_mode = #tpu.pipeline_mode<synchronous>, transform_indices = @transform_2, window_bounds = array<i64: 8, 128>}, {pipeline_mode = #tpu.pipeline_mode<synchronous>, transform_indices = @transform_3, window_bounds = array<i64: 16, 512>}, {pipeline_mode = #tpu.pipeline_mode<synchronous>, transform_indices = @transform_4, window_bounds = array<i64: 128, 512>}, {pipeline_mode = #tpu.pipeline_mode<synchronous>, transform_indices = @transform_5, window_bounds = array<i64: 1, 512>}, {pipeline_mode = #tpu.pipeline_mode<synchronous>, transform_indices = @transform_6, window_bounds = array<i64: 128, 128>}, {pipeline_mode = #tpu.pipeline_mode<synchronous>, transform_indices = @transform_7, window_bounds = array<i64: 1, 128>}, {pipeline_mode = #tpu.pipeline_mode<synchronous>, transform_indices = @transform_8, window_bounds = array<i64: 8, 128>}, {pipeline_mode = #tpu.pipeline_mode<synchronous>, transform_indices = @transform_9, window_bounds = array<i64: 8, 128>}, {pipeline_mode = #tpu.pipeline_mode<synchronous>, transform_indices = @transform_10, window_bounds = array<i64: 8, 128>}]} {
    %c0_i32 = arith.constant 0 : i32
    %0 = arith.cmpi eq, %arg0, %c0_i32 : i32
    %1 = arith.extui %0 : i1 to i32
    %c0_i32_0 = arith.constant 0 : i32
    %2 = arith.cmpi ne, %1, %c0_i32_0 : i32
    scf.if %2 {
      %c0_72 = arith.constant 0 : index
      %c0_73 = arith.constant 0 : index
      %269 = vector.load %arg2[%c0_72, %c0_73] : memref<8x128xf32, #tpu.memory_space<vmem>>, vector<8x128xf32>
      %c0_74 = arith.constant 0 : index
      %c0_75 = arith.constant 0 : index
      %270 = vector.load %arg12[%c0_74, %c0_75] : memref<8x128xf32, #tpu.memory_space<vmem>>, vector<8x128xf32>
      tpu.vector_store %arg12[%c0_74, %c0_75], %269 {strides = array<i32>} : memref<8x128xf32, #tpu.memory_space<vmem>>, vector<8x128xf32>,
      %c0_76 = arith.constant 0 : index
      %c0_77 = arith.constant 0 : index
      %271 = vector.load %arg3[%c0_76, %c0_77] : memref<8x128xf32, #tpu.memory_space<vmem>>, vector<8x128xf32>
      %c0_78 = arith.constant 0 : index
      %c0_79 = arith.constant 0 : index
      %272 = vector.load %arg13[%c0_78, %c0_79] : memref<8x128xf32, #tpu.memory_space<vmem>>, vector<8x128xf32>
      tpu.vector_store %arg13[%c0_78, %c0_79], %271 {strides = array<i32>} : memref<8x128xf32, #tpu.memory_space<vmem>>, vector<8x128xf32>,
    } else {
    }
    %c0 = arith.constant 0 : index
    %c0_1 = arith.constant 0 : index
    %3 = vector.load %arg12[%c0, %c0_1] : memref<8x128xf32, #tpu.memory_space<vmem>>, vector<8x128xf32>
    %c0_2 = arith.constant 0 : index
    %c0_3 = arith.constant 0 : index
    %4 = vector.load %arg13[%c0_2, %c0_3] : memref<8x128xf32, #tpu.memory_space<vmem>>, vector<8x128xf32>
    %c0_4 = arith.constant 0 : index
    %c0_5 = arith.constant 0 : index
    %5 = vector.load %arg4[%c0_4, %c0_5] : memref<16x512xf32, #tpu.memory_space<vmem>>, vector<16x512xf32>
    %c0_6 = arith.constant 0 : index
    %c0_7 = arith.constant 0 : index
    %6 = vector.load %arg5[%c0_6, %c0_7] : memref<128x512xf32, #tpu.memory_space<vmem>>, vector<128x512xf32>
    %c0_8 = arith.constant 0 : index
    %c0_9 = arith.constant 0 : index
    %7 = vector.load %arg6[%c0_8, %c0_9] : memref<1x512xf32, #tpu.memory_space<vmem>>, vector<1x512xf32>
    %c0_10 = arith.constant 0 : index
    %c0_11 = arith.constant 0 : index
    %c0_12 = arith.constant 0 : index
    %8 = vector.load %arg1[%c0_10, %c0_11, %c0_12] : memref<8x8x16xf32, #tpu.memory_space<vmem>>, vector<8x1x16xf32>
    %9 = vector.shape_cast %8 : vector<8x1x16xf32> to vector<8x16xf32>
    %cst = arith.constant dense<0.000000e+00> : vector<8x512xf32>
    %10 = tpu.matmul %9, %5, %cst {dimension_numbers = #tpu.dot_dimension_numbers<[1], [0], [0], [1], [0, 0, 1, 1], [], []>} : vector<8x16xf32>, vector<16x512xf32>, vector<8x512xf32> -> vector<8x512xf32>
    %cst_13 = arith.constant dense<0.000000e+00> : vector<8x512xf32>
    %11 = tpu.matmul %3, %6, %cst_13 {dimension_numbers = #tpu.dot_dimension_numbers<[1], [0], [0], [1], [0, 0, 1, 1], [], []>} : vector<8x128xf32>, vector<128x512xf32>, vector<8x512xf32> -> vector<8x512xf32>
    %12 = arith.addf %10, %11 : vector<8x512xf32>
    %13 = vector.broadcast %7 : vector<1x512xf32> to vector<8x512xf32>
    %14 = arith.addf %12, %13 : vector<8x512xf32>
    %15 = vector.extract_strided_slice %14 {offsets = [0, 0], sizes = [8, 128], strides = [1, 1]} : vector<8x512xf32> to vector<8x128xf32>
    %16 = arith.negf %15 : vector<8x128xf32>
    %17 = math.exp %16 : vector<8x128xf32>
    %cst_14 = arith.constant 1.000000e+00 : f32
    %18 = vector.broadcast %cst_14 : f32 to vector<8x128xf32>
    %19 = arith.addf %18, %17 : vector<8x128xf32>
    %20 = arith.divf %18, %19 : vector<8x128xf32>
    %21 = vector.extract_strided_slice %14 {offsets = [0, 128], sizes = [8, 128], strides = [1, 1]} : vector<8x512xf32> to vector<8x128xf32>
    %22 = arith.negf %21 : vector<8x128xf32>
    %23 = math.exp %22 : vector<8x128xf32>
    %cst_15 = arith.constant 1.000000e+00 : f32
    %24 = vector.broadcast %cst_15 : f32 to vector<8x128xf32>
    %25 = arith.addf %24, %23 : vector<8x128xf32>
    %26 = arith.divf %24, %25 : vector<8x128xf32>
    %27 = vector.extract_strided_slice %14 {offsets = [0, 256], sizes = [8, 128], strides = [1, 1]} : vector<8x512xf32> to vector<8x128xf32>
    %28 = math.tanh %27 : vector<8x128xf32>
    %29 = vector.extract_strided_slice %14 {offsets = [0, 384], sizes = [8, 128], strides = [1, 1]} : vector<8x512xf32> to vector<8x128xf32>
    %30 = arith.negf %29 : vector<8x128xf32>
    %31 = math.exp %30 : vector<8x128xf32>
    %cst_16 = arith.constant 1.000000e+00 : f32
    %32 = vector.broadcast %cst_16 : f32 to vector<8x128xf32>
    %33 = arith.addf %32, %31 : vector<8x128xf32>
    %34 = arith.divf %32, %33 : vector<8x128xf32>
    %35 = arith.mulf %26, %4 : vector<8x128xf32>
    %36 = arith.mulf %20, %28 : vector<8x128xf32>
    %37 = arith.addf %35, %36 : vector<8x128xf32>
    %38 = math.tanh %37 : vector<8x128xf32>
    %39 = arith.mulf %34, %38 : vector<8x128xf32>
    %c0_17 = arith.constant 0 : index
    %c1 = arith.constant 1 : index
    %c0_18 = arith.constant 0 : index
    %40 = vector.load %arg1[%c0_17, %c1, %c0_18] : memref<8x8x16xf32, #tpu.memory_space<vmem>>, vector<8x1x16xf32>
    %41 = vector.shape_cast %40 : vector<8x1x16xf32> to vector<8x16xf32>
    %cst_19 = arith.constant dense<0.000000e+00> : vector<8x512xf32>
    %42 = tpu.matmul %41, %5, %cst_19 {dimension_numbers = #tpu.dot_dimension_numbers<[1], [0], [0], [1], [0, 0, 1, 1], [], []>} : vector<8x16xf32>, vector<16x512xf32>, vector<8x512xf32> -> vector<8x512xf32>
    %cst_20 = arith.constant dense<0.000000e+00> : vector<8x512xf32>
    %43 = tpu.matmul %39, %6, %cst_20 {dimension_numbers = #tpu.dot_dimension_numbers<[1], [0], [0], [1], [0, 0, 1, 1], [], []>} : vector<8x128xf32>, vector<128x512xf32>, vector<8x512xf32> -> vector<8x512xf32>
    %44 = arith.addf %42, %43 : vector<8x512xf32>
    %45 = vector.broadcast %7 : vector<1x512xf32> to vector<8x512xf32>
    %46 = arith.addf %44, %45 : vector<8x512xf32>
    %47 = vector.extract_strided_slice %46 {offsets = [0, 0], sizes = [8, 128], strides = [1, 1]} : vector<8x512xf32> to vector<8x128xf32>
    %48 = arith.negf %47 : vector<8x128xf32>
    %49 = math.exp %48 : vector<8x128xf32>
    %cst_21 = arith.constant 1.000000e+00 : f32
    %50 = vector.broadcast %cst_21 : f32 to vector<8x128xf32>
    %51 = arith.addf %50, %49 : vector<8x128xf32>
    %52 = arith.divf %50, %51 : vector<8x128xf32>
    %53 = vector.extract_strided_slice %46 {offsets = [0, 128], sizes = [8, 128], strides = [1, 1]} : vector<8x512xf32> to vector<8x128xf32>
    %54 = arith.negf %53 : vector<8x128xf32>
    %55 = math.exp %54 : vector<8x128xf32>
    %cst_22 = arith.constant 1.000000e+00 : f32
    %56 = vector.broadcast %cst_22 : f32 to vector<8x128xf32>
    %57 = arith.addf %56, %55 : vector<8x128xf32>
    %58 = arith.divf %56, %57 : vector<8x128xf32>
    %59 = vector.extract_strided_slice %46 {offsets = [0, 256], sizes = [8, 128], strides = [1, 1]} : vector<8x512xf32> to vector<8x128xf32>
    %60 = math.tanh %59 : vector<8x128xf32>
    %61 = vector.extract_strided_slice %46 {offsets = [0, 384], sizes = [8, 128], strides = [1, 1]} : vector<8x512xf32> to vector<8x128xf32>
    %62 = arith.negf %61 : vector<8x128xf32>
    %63 = math.exp %62 : vector<8x128xf32>
    %cst_23 = arith.constant 1.000000e+00 : f32
    %64 = vector.broadcast %cst_23 : f32 to vector<8x128xf32>
    %65 = arith.addf %64, %63 : vector<8x128xf32>
    %66 = arith.divf %64, %65 : vector<8x128xf32>
    %67 = arith.mulf %58, %37 : vector<8x128xf32>
    %68 = arith.mulf %52, %60 : vector<8x128xf32>
    %69 = arith.addf %67, %68 : vector<8x128xf32>
    %70 = math.tanh %69 : vector<8x128xf32>
    %71 = arith.mulf %66, %70 : vector<8x128xf32>
    %c0_24 = arith.constant 0 : index
    %c2 = arith.constant 2 : index
    %c0_25 = arith.constant 0 : index
    %72 = vector.load %arg1[%c0_24, %c2, %c0_25] : memref<8x8x16xf32, #tpu.memory_space<vmem>>, vector<8x1x16xf32>
    %73 = vector.shape_cast %72 : vector<8x1x16xf32> to vector<8x16xf32>
    %cst_26 = arith.constant dense<0.000000e+00> : vector<8x512xf32>
    %74 = tpu.matmul %73, %5, %cst_26 {dimension_numbers = #tpu.dot_dimension_numbers<[1], [0], [0], [1], [0, 0, 1, 1], [], []>} : vector<8x16xf32>, vector<16x512xf32>, vector<8x512xf32> -> vector<8x512xf32>
    %cst_27 = arith.constant dense<0.000000e+00> : vector<8x512xf32>
    %75 = tpu.matmul %71, %6, %cst_27 {dimension_numbers = #tpu.dot_dimension_numbers<[1], [0], [0], [1], [0, 0, 1, 1], [], []>} : vector<8x128xf32>, vector<128x512xf32>, vector<8x512xf32> -> vector<8x512xf32>
    %76 = arith.addf %74, %75 : vector<8x512xf32>
    %77 = vector.broadcast %7 : vector<1x512xf32> to vector<8x512xf32>
    %78 = arith.addf %76, %77 : vector<8x512xf32>
    %79 = vector.extract_strided_slice %78 {offsets = [0, 0], sizes = [8, 128], strides = [1, 1]} : vector<8x512xf32> to vector<8x128xf32>
    %80 = arith.negf %79 : vector<8x128xf32>
    %81 = math.exp %80 : vector<8x128xf32>
    %cst_28 = arith.constant 1.000000e+00 : f32
    %82 = vector.broadcast %cst_28 : f32 to vector<8x128xf32>
    %83 = arith.addf %82, %81 : vector<8x128xf32>
    %84 = arith.divf %82, %83 : vector<8x128xf32>
    %85 = vector.extract_strided_slice %78 {offsets = [0, 128], sizes = [8, 128], strides = [1, 1]} : vector<8x512xf32> to vector<8x128xf32>
    %86 = arith.negf %85 : vector<8x128xf32>
    %87 = math.exp %86 : vector<8x128xf32>
    %cst_29 = arith.constant 1.000000e+00 : f32
    %88 = vector.broadcast %cst_29 : f32 to vector<8x128xf32>
    %89 = arith.addf %88, %87 : vector<8x128xf32>
    %90 = arith.divf %88, %89 : vector<8x128xf32>
    %91 = vector.extract_strided_slice %78 {offsets = [0, 256], sizes = [8, 128], strides = [1, 1]} : vector<8x512xf32> to vector<8x128xf32>
    %92 = math.tanh %91 : vector<8x128xf32>
    %93 = vector.extract_strided_slice %78 {offsets = [0, 384], sizes = [8, 128], strides = [1, 1]} : vector<8x512xf32> to vector<8x128xf32>
    %94 = arith.negf %93 : vector<8x128xf32>
    %95 = math.exp %94 : vector<8x128xf32>
    %cst_30 = arith.constant 1.000000e+00 : f32
    %96 = vector.broadcast %cst_30 : f32 to vector<8x128xf32>
    %97 = arith.addf %96, %95 : vector<8x128xf32>
    %98 = arith.divf %96, %97 : vector<8x128xf32>
    %99 = arith.mulf %90, %69 : vector<8x128xf32>
    %100 = arith.mulf %84, %92 : vector<8x128xf32>
    %101 = arith.addf %99, %100 : vector<8x128xf32>
    %102 = math.tanh %101 : vector<8x128xf32>
    %103 = arith.mulf %98, %102 : vector<8x128xf32>
    %c0_31 = arith.constant 0 : index
    %c3 = arith.constant 3 : index
    %c0_32 = arith.constant 0 : index
    %104 = vector.load %arg1[%c0_31, %c3, %c0_32] : memref<8x8x16xf32, #tpu.memory_space<vmem>>, vector<8x1x16xf32>
    %105 = vector.shape_cast %104 : vector<8x1x16xf32> to vector<8x16xf32>
    %cst_33 = arith.constant dense<0.000000e+00> : vector<8x512xf32>
    %106 = tpu.matmul %105, %5, %cst_33 {dimension_numbers = #tpu.dot_dimension_numbers<[1], [0], [0], [1], [0, 0, 1, 1], [], []>} : vector<8x16xf32>, vector<16x512xf32>, vector<8x512xf32> -> vector<8x512xf32>
    %cst_34 = arith.constant dense<0.000000e+00> : vector<8x512xf32>
    %107 = tpu.matmul %103, %6, %cst_34 {dimension_numbers = #tpu.dot_dimension_numbers<[1], [0], [0], [1], [0, 0, 1, 1], [], []>} : vector<8x128xf32>, vector<128x512xf32>, vector<8x512xf32> -> vector<8x512xf32>
    %108 = arith.addf %106, %107 : vector<8x512xf32>
    %109 = vector.broadcast %7 : vector<1x512xf32> to vector<8x512xf32>
    %110 = arith.addf %108, %109 : vector<8x512xf32>
    %111 = vector.extract_strided_slice %110 {offsets = [0, 0], sizes = [8, 128], strides = [1, 1]} : vector<8x512xf32> to vector<8x128xf32>
    %112 = arith.negf %111 : vector<8x128xf32>
    %113 = math.exp %112 : vector<8x128xf32>
    %cst_35 = arith.constant 1.000000e+00 : f32
    %114 = vector.broadcast %cst_35 : f32 to vector<8x128xf32>
    %115 = arith.addf %114, %113 : vector<8x128xf32>
    %116 = arith.divf %114, %115 : vector<8x128xf32>
    %117 = vector.extract_strided_slice %110 {offsets = [0, 128], sizes = [8, 128], strides = [1, 1]} : vector<8x512xf32> to vector<8x128xf32>
    %118 = arith.negf %117 : vector<8x128xf32>
    %119 = math.exp %118 : vector<8x128xf32>
    %cst_36 = arith.constant 1.000000e+00 : f32
    %120 = vector.broadcast %cst_36 : f32 to vector<8x128xf32>
    %121 = arith.addf %120, %119 : vector<8x128xf32>
    %122 = arith.divf %120, %121 : vector<8x128xf32>
    %123 = vector.extract_strided_slice %110 {offsets = [0, 256], sizes = [8, 128], strides = [1, 1]} : vector<8x512xf32> to vector<8x128xf32>
    %124 = math.tanh %123 : vector<8x128xf32>
    %125 = vector.extract_strided_slice %110 {offsets = [0, 384], sizes = [8, 128], strides = [1, 1]} : vector<8x512xf32> to vector<8x128xf32>
    %126 = arith.negf %125 : vector<8x128xf32>
    %127 = math.exp %126 : vector<8x128xf32>
    %cst_37 = arith.constant 1.000000e+00 : f32
    %128 = vector.broadcast %cst_37 : f32 to vector<8x128xf32>
    %129 = arith.addf %128, %127 : vector<8x128xf32>
    %130 = arith.divf %128, %129 : vector<8x128xf32>
    %131 = arith.mulf %122, %101 : vector<8x128xf32>
    %132 = arith.mulf %116, %124 : vector<8x128xf32>
    %133 = arith.addf %131, %132 : vector<8x128xf32>
    %134 = math.tanh %133 : vector<8x128xf32>
    %135 = arith.mulf %130, %134 : vector<8x128xf32>
    %c0_38 = arith.constant 0 : index
    %c4 = arith.constant 4 : index
    %c0_39 = arith.constant 0 : index
    %136 = vector.load %arg1[%c0_38, %c4, %c0_39] : memref<8x8x16xf32, #tpu.memory_space<vmem>>, vector<8x1x16xf32>
    %137 = vector.shape_cast %136 : vector<8x1x16xf32> to vector<8x16xf32>
    %cst_40 = arith.constant dense<0.000000e+00> : vector<8x512xf32>
    %138 = tpu.matmul %137, %5, %cst_40 {dimension_numbers = #tpu.dot_dimension_numbers<[1], [0], [0], [1], [0, 0, 1, 1], [], []>} : vector<8x16xf32>, vector<16x512xf32>, vector<8x512xf32> -> vector<8x512xf32>
    %cst_41 = arith.constant dense<0.000000e+00> : vector<8x512xf32>
    %139 = tpu.matmul %135, %6, %cst_41 {dimension_numbers = #tpu.dot_dimension_numbers<[1], [0], [0], [1], [0, 0, 1, 1], [], []>} : vector<8x128xf32>, vector<128x512xf32>, vector<8x512xf32> -> vector<8x512xf32>
    %140 = arith.addf %138, %139 : vector<8x512xf32>
    %141 = vector.broadcast %7 : vector<1x512xf32> to vector<8x512xf32>
    %142 = arith.addf %140, %141 : vector<8x512xf32>
    %143 = vector.extract_strided_slice %142 {offsets = [0, 0], sizes = [8, 128], strides = [1, 1]} : vector<8x512xf32> to vector<8x128xf32>
    %144 = arith.negf %143 : vector<8x128xf32>
    %145 = math.exp %144 : vector<8x128xf32>
    %cst_42 = arith.constant 1.000000e+00 : f32
    %146 = vector.broadcast %cst_42 : f32 to vector<8x128xf32>
    %147 = arith.addf %146, %145 : vector<8x128xf32>
    %148 = arith.divf %146, %147 : vector<8x128xf32>
    %149 = vector.extract_strided_slice %142 {offsets = [0, 128], sizes = [8, 128], strides = [1, 1]} : vector<8x512xf32> to vector<8x128xf32>
    %150 = arith.negf %149 : vector<8x128xf32>
    %151 = math.exp %150 : vector<8x128xf32>
    %cst_43 = arith.constant 1.000000e+00 : f32
    %152 = vector.broadcast %cst_43 : f32 to vector<8x128xf32>
    %153 = arith.addf %152, %151 : vector<8x128xf32>
    %154 = arith.divf %152, %153 : vector<8x128xf32>
    %155 = vector.extract_strided_slice %142 {offsets = [0, 256], sizes = [8, 128], strides = [1, 1]} : vector<8x512xf32> to vector<8x128xf32>
    %156 = math.tanh %155 : vector<8x128xf32>
    %157 = vector.extract_strided_slice %142 {offsets = [0, 384], sizes = [8, 128], strides = [1, 1]} : vector<8x512xf32> to vector<8x128xf32>
    %158 = arith.negf %157 : vector<8x128xf32>
    %159 = math.exp %158 : vector<8x128xf32>
    %cst_44 = arith.constant 1.000000e+00 : f32
    %160 = vector.broadcast %cst_44 : f32 to vector<8x128xf32>
    %161 = arith.addf %160, %159 : vector<8x128xf32>
    %162 = arith.divf %160, %161 : vector<8x128xf32>
    %163 = arith.mulf %154, %133 : vector<8x128xf32>
    %164 = arith.mulf %148, %156 : vector<8x128xf32>
    %165 = arith.addf %163, %164 : vector<8x128xf32>
    %166 = math.tanh %165 : vector<8x128xf32>
    %167 = arith.mulf %162, %166 : vector<8x128xf32>
    %c0_45 = arith.constant 0 : index
    %c5 = arith.constant 5 : index
    %c0_46 = arith.constant 0 : index
    %168 = vector.load %arg1[%c0_45, %c5, %c0_46] : memref<8x8x16xf32, #tpu.memory_space<vmem>>, vector<8x1x16xf32>
    %169 = vector.shape_cast %168 : vector<8x1x16xf32> to vector<8x16xf32>
    %cst_47 = arith.constant dense<0.000000e+00> : vector<8x512xf32>
    %170 = tpu.matmul %169, %5, %cst_47 {dimension_numbers = #tpu.dot_dimension_numbers<[1], [0], [0], [1], [0, 0, 1, 1], [], []>} : vector<8x16xf32>, vector<16x512xf32>, vector<8x512xf32> -> vector<8x512xf32>
    %cst_48 = arith.constant dense<0.000000e+00> : vector<8x512xf32>
    %171 = tpu.matmul %167, %6, %cst_48 {dimension_numbers = #tpu.dot_dimension_numbers<[1], [0], [0], [1], [0, 0, 1, 1], [], []>} : vector<8x128xf32>, vector<128x512xf32>, vector<8x512xf32> -> vector<8x512xf32>
    %172 = arith.addf %170, %171 : vector<8x512xf32>
    %173 = vector.broadcast %7 : vector<1x512xf32> to vector<8x512xf32>
    %174 = arith.addf %172, %173 : vector<8x512xf32>
    %175 = vector.extract_strided_slice %174 {offsets = [0, 0], sizes = [8, 128], strides = [1, 1]} : vector<8x512xf32> to vector<8x128xf32>
    %176 = arith.negf %175 : vector<8x128xf32>
    %177 = math.exp %176 : vector<8x128xf32>
    %cst_49 = arith.constant 1.000000e+00 : f32
    %178 = vector.broadcast %cst_49 : f32 to vector<8x128xf32>
    %179 = arith.addf %178, %177 : vector<8x128xf32>
    %180 = arith.divf %178, %179 : vector<8x128xf32>
    %181 = vector.extract_strided_slice %174 {offsets = [0, 128], sizes = [8, 128], strides = [1, 1]} : vector<8x512xf32> to vector<8x128xf32>
    %182 = arith.negf %181 : vector<8x128xf32>
    %183 = math.exp %182 : vector<8x128xf32>
    %cst_50 = arith.constant 1.000000e+00 : f32
    %184 = vector.broadcast %cst_50 : f32 to vector<8x128xf32>
    %185 = arith.addf %184, %183 : vector<8x128xf32>
    %186 = arith.divf %184, %185 : vector<8x128xf32>
    %187 = vector.extract_strided_slice %174 {offsets = [0, 256], sizes = [8, 128], strides = [1, 1]} : vector<8x512xf32> to vector<8x128xf32>
    %188 = math.tanh %187 : vector<8x128xf32>
    %189 = vector.extract_strided_slice %174 {offsets = [0, 384], sizes = [8, 128], strides = [1, 1]} : vector<8x512xf32> to vector<8x128xf32>
    %190 = arith.negf %189 : vector<8x128xf32>
    %191 = math.exp %190 : vector<8x128xf32>
    %cst_51 = arith.constant 1.000000e+00 : f32
    %192 = vector.broadcast %cst_51 : f32 to vector<8x128xf32>
    %193 = arith.addf %192, %191 : vector<8x128xf32>
    %194 = arith.divf %192, %193 : vector<8x128xf32>
    %195 = arith.mulf %186, %165 : vector<8x128xf32>
    %196 = arith.mulf %180, %188 : vector<8x128xf32>
    %197 = arith.addf %195, %196 : vector<8x128xf32>
    %198 = math.tanh %197 : vector<8x128xf32>
    %199 = arith.mulf %194, %198 : vector<8x128xf32>
    %c0_52 = arith.constant 0 : index
    %c6 = arith.constant 6 : index
    %c0_53 = arith.constant 0 : index
    %200 = vector.load %arg1[%c0_52, %c6, %c0_53] : memref<8x8x16xf32, #tpu.memory_space<vmem>>, vector<8x1x16xf32>
    %201 = vector.shape_cast %200 : vector<8x1x16xf32> to vector<8x16xf32>
    %cst_54 = arith.constant dense<0.000000e+00> : vector<8x512xf32>
    %202 = tpu.matmul %201, %5, %cst_54 {dimension_numbers = #tpu.dot_dimension_numbers<[1], [0], [0], [1], [0, 0, 1, 1], [], []>} : vector<8x16xf32>, vector<16x512xf32>, vector<8x512xf32> -> vector<8x512xf32>
    %cst_55 = arith.constant dense<0.000000e+00> : vector<8x512xf32>
    %203 = tpu.matmul %199, %6, %cst_55 {dimension_numbers = #tpu.dot_dimension_numbers<[1], [0], [0], [1], [0, 0, 1, 1], [], []>} : vector<8x128xf32>, vector<128x512xf32>, vector<8x512xf32> -> vector<8x512xf32>
    %204 = arith.addf %202, %203 : vector<8x512xf32>
    %205 = vector.broadcast %7 : vector<1x512xf32> to vector<8x512xf32>
    %206 = arith.addf %204, %205 : vector<8x512xf32>
    %207 = vector.extract_strided_slice %206 {offsets = [0, 0], sizes = [8, 128], strides = [1, 1]} : vector<8x512xf32> to vector<8x128xf32>
    %208 = arith.negf %207 : vector<8x128xf32>
    %209 = math.exp %208 : vector<8x128xf32>
    %cst_56 = arith.constant 1.000000e+00 : f32
    %210 = vector.broadcast %cst_56 : f32 to vector<8x128xf32>
    %211 = arith.addf %210, %209 : vector<8x128xf32>
    %212 = arith.divf %210, %211 : vector<8x128xf32>
    %213 = vector.extract_strided_slice %206 {offsets = [0, 128], sizes = [8, 128], strides = [1, 1]} : vector<8x512xf32> to vector<8x128xf32>
    %214 = arith.negf %213 : vector<8x128xf32>
    %215 = math.exp %214 : vector<8x128xf32>
    %cst_57 = arith.constant 1.000000e+00 : f32
    %216 = vector.broadcast %cst_57 : f32 to vector<8x128xf32>
    %217 = arith.addf %216, %215 : vector<8x128xf32>
    %218 = arith.divf %216, %217 : vector<8x128xf32>
    %219 = vector.extract_strided_slice %206 {offsets = [0, 256], sizes = [8, 128], strides = [1, 1]} : vector<8x512xf32> to vector<8x128xf32>
    %220 = math.tanh %219 : vector<8x128xf32>
    %221 = vector.extract_strided_slice %206 {offsets = [0, 384], sizes = [8, 128], strides = [1, 1]} : vector<8x512xf32> to vector<8x128xf32>
    %222 = arith.negf %221 : vector<8x128xf32>
    %223 = math.exp %222 : vector<8x128xf32>
    %cst_58 = arith.constant 1.000000e+00 : f32
    %224 = vector.broadcast %cst_58 : f32 to vector<8x128xf32>
    %225 = arith.addf %224, %223 : vector<8x128xf32>
    %226 = arith.divf %224, %225 : vector<8x128xf32>
    %227 = arith.mulf %218, %197 : vector<8x128xf32>
    %228 = arith.mulf %212, %220 : vector<8x128xf32>
    %229 = arith.addf %227, %228 : vector<8x128xf32>
    %230 = math.tanh %229 : vector<8x128xf32>
    %231 = arith.mulf %226, %230 : vector<8x128xf32>
    %c0_59 = arith.constant 0 : index
    %c7 = arith.constant 7 : index
    %c0_60 = arith.constant 0 : index
    %232 = vector.load %arg1[%c0_59, %c7, %c0_60] : memref<8x8x16xf32, #tpu.memory_space<vmem>>, vector<8x1x16xf32>
    %233 = vector.shape_cast %232 : vector<8x1x16xf32> to vector<8x16xf32>
    %cst_61 = arith.constant dense<0.000000e+00> : vector<8x512xf32>
    %234 = tpu.matmul %233, %5, %cst_61 {dimension_numbers = #tpu.dot_dimension_numbers<[1], [0], [0], [1], [0, 0, 1, 1], [], []>} : vector<8x16xf32>, vector<16x512xf32>, vector<8x512xf32> -> vector<8x512xf32>
    %cst_62 = arith.constant dense<0.000000e+00> : vector<8x512xf32>
    %235 = tpu.matmul %231, %6, %cst_62 {dimension_numbers = #tpu.dot_dimension_numbers<[1], [0], [0], [1], [0, 0, 1, 1], [], []>} : vector<8x128xf32>, vector<128x512xf32>, vector<8x512xf32> -> vector<8x512xf32>
    %236 = arith.addf %234, %235 : vector<8x512xf32>
    %237 = vector.broadcast %7 : vector<1x512xf32> to vector<8x512xf32>
    %238 = arith.addf %236, %237 : vector<8x512xf32>
    %239 = vector.extract_strided_slice %238 {offsets = [0, 0], sizes = [8, 128], strides = [1, 1]} : vector<8x512xf32> to vector<8x128xf32>
    %240 = arith.negf %239 : vector<8x128xf32>
    %241 = math.exp %240 : vector<8x128xf32>
    %cst_63 = arith.constant 1.000000e+00 : f32
    %242 = vector.broadcast %cst_63 : f32 to vector<8x128xf32>
    %243 = arith.addf %242, %241 : vector<8x128xf32>
    %244 = arith.divf %242, %243 : vector<8x128xf32>
    %245 = vector.extract_strided_slice %238 {offsets = [0, 128], sizes = [8, 128], strides = [1, 1]} : vector<8x512xf32> to vector<8x128xf32>
    %246 = arith.negf %245 : vector<8x128xf32>
    %247 = math.exp %246 : vector<8x128xf32>
    %cst_64 = arith.constant 1.000000e+00 : f32
    %248 = vector.broadcast %cst_64 : f32 to vector<8x128xf32>
    %249 = arith.addf %248, %247 : vector<8x128xf32>
    %250 = arith.divf %248, %249 : vector<8x128xf32>
    %251 = vector.extract_strided_slice %238 {offsets = [0, 256], sizes = [8, 128], strides = [1, 1]} : vector<8x512xf32> to vector<8x128xf32>
    %252 = math.tanh %251 : vector<8x128xf32>
    %253 = vector.extract_strided_slice %238 {offsets = [0, 384], sizes = [8, 128], strides = [1, 1]} : vector<8x512xf32> to vector<8x128xf32>
    %254 = arith.negf %253 : vector<8x128xf32>
    %255 = math.exp %254 : vector<8x128xf32>
    %cst_65 = arith.constant 1.000000e+00 : f32
    %256 = vector.broadcast %cst_65 : f32 to vector<8x128xf32>
    %257 = arith.addf %256, %255 : vector<8x128xf32>
    %258 = arith.divf %256, %257 : vector<8x128xf32>
    %259 = arith.mulf %250, %229 : vector<8x128xf32>
    %260 = arith.mulf %244, %252 : vector<8x128xf32>
    %261 = arith.addf %259, %260 : vector<8x128xf32>
    %262 = math.tanh %261 : vector<8x128xf32>
    %263 = arith.mulf %258, %262 : vector<8x128xf32>
    %c0_66 = arith.constant 0 : index
    %c0_67 = arith.constant 0 : index
    %264 = vector.load %arg12[%c0_66, %c0_67] : memref<8x128xf32, #tpu.memory_space<vmem>>, vector<8x128xf32>
    tpu.vector_store %arg12[%c0_66, %c0_67], %263 {strides = array<i32>} : memref<8x128xf32, #tpu.memory_space<vmem>>, vector<8x128xf32>,
    %c0_68 = arith.constant 0 : index
    %c0_69 = arith.constant 0 : index
    %265 = vector.load %arg13[%c0_68, %c0_69] : memref<8x128xf32, #tpu.memory_space<vmem>>, vector<8x128xf32>
    tpu.vector_store %arg13[%c0_68, %c0_69], %261 {strides = array<i32>} : memref<8x128xf32, #tpu.memory_space<vmem>>, vector<8x128xf32>,
    %c0_i32_70 = arith.constant 0 : i32
    %266 = arith.cmpi eq, %arg0, %c0_i32_70 : i32
    %267 = arith.extui %266 : i1 to i32
    %c0_i32_71 = arith.constant 0 : i32
    %268 = arith.cmpi ne, %267, %c0_i32_71 : i32
    scf.if %268 {
      %c0_72 = arith.constant 0 : index
      %c0_73 = arith.constant 0 : index
      %269 = vector.load %arg10[%c0_72, %c0_73] : memref<8x128xf32, #tpu.memory_space<vmem>>, vector<8x128xf32>
      tpu.vector_store %arg10[%c0_72, %c0_73], %263 {strides = array<i32>} : memref<8x128xf32, #tpu.memory_space<vmem>>, vector<8x128xf32>,
      %c0_74 = arith.constant 0 : index
      %c0_75 = arith.constant 0 : index
      %270 = vector.load %arg11[%c0_74, %c0_75] : memref<8x128xf32, #tpu.memory_space<vmem>>, vector<8x128xf32>
      tpu.vector_store %arg11[%c0_74, %c0_75], %261 {strides = array<i32>} : memref<8x128xf32, #tpu.memory_space<vmem>>, vector<8x128xf32>,
      %c0_76 = arith.constant 0 : index
      %c0_77 = arith.constant 0 : index
      %271 = vector.load %arg7[%c0_76, %c0_77] : memref<128x128xf32, #tpu.memory_space<vmem>>, vector<128x128xf32>
      %cst_78 = arith.constant dense<0.000000e+00> : vector<8x128xf32>
      %272 = tpu.matmul %263, %271, %cst_78 {dimension_numbers = #tpu.dot_dimension_numbers<[1], [0], [0], [1], [0, 0, 1, 1], [], []>} : vector<8x128xf32>, vector<128x128xf32>, vector<8x128xf32> -> vector<8x128xf32>
      %c0_79 = arith.constant 0 : index
      %c0_80 = arith.constant 0 : index
      %273 = vector.load %arg8[%c0_79, %c0_80] : memref<1x128xf32, #tpu.memory_space<vmem>>, vector<1x128xf32>
      %274 = vector.broadcast %273 : vector<1x128xf32> to vector<8x128xf32>
      %275 = arith.addf %272, %274 : vector<8x128xf32>
      %c0_81 = arith.constant 0 : index
      %c0_82 = arith.constant 0 : index
      %276 = vector.load %arg9[%c0_81, %c0_82] : memref<8x128xf32, #tpu.memory_space<vmem>>, vector<8x128xf32>
      tpu.vector_store %arg9[%c0_81, %c0_82], %275 {strides = array<i32>} : memref<8x128xf32, #tpu.memory_space<vmem>>, vector<8x128xf32>,
    } else {
    }
    return
  }
  func.func @transform_0(%arg0: i32) -> (i32, i32, i32) {
    %c0_i32 = arith.constant 0 : i32
    %c0_i32_0 = arith.constant 0 : i32
    %c0_i32_1 = arith.constant 0 : i32
    return %c0_i32, %arg0, %c0_i32_0 : i32, i32, i32
  }
  func.func @transform_1(%arg0: i32) -> (i32, i32) {
    %c0_i32 = arith.constant 0 : i32
    %c0_i32_0 = arith.constant 0 : i32
    %c0_i32_1 = arith.constant 0 : i32
    return %c0_i32, %c0_i32_0 : i32, i32
  }
  func.func @transform_2(%arg0: i32) -> (i32, i32) {
    %c0_i32 = arith.constant 0 : i32
    %c0_i32_0 = arith.constant 0 : i32
    %c0_i32_1 = arith.constant 0 : i32
    return %c0_i32, %c0_i32_0 : i32, i32
  }
  func.func @transform_3(%arg0: i32) -> (i32, i32) {
    %c0_i32 = arith.constant 0 : i32
    %c0_i32_0 = arith.constant 0 : i32
    %c0_i32_1 = arith.constant 0 : i32
    return %c0_i32, %c0_i32_0 : i32, i32
  }
  func.func @transform_4(%arg0: i32) -> (i32, i32) {
    %c0_i32 = arith.constant 0 : i32
    %c0_i32_0 = arith.constant 0 : i32
    %c0_i32_1 = arith.constant 0 : i32
    return %c0_i32, %c0_i32_0 : i32, i32
  }
  func.func @transform_5(%arg0: i32) -> (i32, i32) {
    %c0_i32 = arith.constant 0 : i32
    %c0_i32_0 = arith.constant 0 : i32
    %c0_i32_1 = arith.constant 0 : i32
    return %c0_i32, %c0_i32_0 : i32, i32
  }
  func.func @transform_6(%arg0: i32) -> (i32, i32) {
    %c0_i32 = arith.constant 0 : i32
    %c0_i32_0 = arith.constant 0 : i32
    %c0_i32_1 = arith.constant 0 : i32
    return %c0_i32, %c0_i32_0 : i32, i32
  }
  func.func @transform_7(%arg0: i32) -> (i32, i32) {
    %c0_i32 = arith.constant 0 : i32
    %c0_i32_0 = arith.constant 0 : i32
    %c0_i32_1 = arith.constant 0 : i32
    return %c0_i32, %c0_i32_0 : i32, i32
  }
  func.func @transform_8(%arg0: i32) -> (i32, i32) {
    %c0_i32 = arith.constant 0 : i32
    %c0_i32_0 = arith.constant 0 : i32
    %c0_i32_1 = arith.constant 0 : i32
    return %c0_i32, %c0_i32_0 : i32, i32
  }
  func.func @transform_9(%arg0: i32) -> (i32, i32) {
    %c0_i32 = arith.constant 0 : i32
    %c0_i32_0 = arith.constant 0 : i32
    %c0_i32_1 = arith.constant 0 : i32
    return %c0_i32, %c0_i32_0 : i32, i32
  }
  func.func @transform_10(%arg0: i32) -> (i32, i32) {
    %c0_i32 = arith.constant 0 : i32
    %c0_i32_0 = arith.constant 0 : i32
    %c0_i32_1 = arith.constant 0 : i32
    return %c0_i32, %c0_i32_0 : i32, i32
  }
}

</mosaic_0001>

<bundles_post_ra>
// kernel: lstm_model_forward.1
= control target key start
LH: loop header
LB: loop body
LE: loop exit
PB: predicated region body
PF: predicated region fallthrough
CT: control target
= control target key end

     0   :  { %v5118_v3 = vmov 0.0   ;;  %vm274_vm0 = vcmask 1041409   ;;  %vm277_vm1 = vcmask 1042434   ;;  %vm280_vm2 = vcmask 1043459   ;;  %s5107_s4 = inlined_call_operand.vmem [shape: f32[128,512], index: 4, kind: input, shape index: {}]   ;;  %s5108_s0 = inlined_call_operand.vmem [shape: f32[8,8,16], index: 0, kind: input, shape index: {}]   ;;  %s5109_s1 = inlined_call_operand.vmem [shape: f32[8,128], index: 1, kind: input, shape index: {}]   ;;  %s5110_s3 = inlined_call_operand.vmem [shape: f32[16,512], index: 3, kind: input, shape index: {}]   ;;  %s5111_s5 = inlined_call_operand.vmem [shape: f32[1,512], index: 5, kind: input, shape index: {}]   ;;  %s5112_s2 = inlined_call_operand.vmem [shape: f32[8,128], index: 2, kind: input, shape index: {}]   ;;  %s5113_s6 = inlined_call_operand.vmem [shape: f32[128,128], index: 6, kind: input, shape index: {}]   ;;  %s5114_s10 = inlined_call_operand.vmem [shape: f32[8,128], index: 10, kind: output, shape index: {2}]   ;;  %s5115_s9 = inlined_call_operand.vmem [shape: f32[8,128], index: 9, kind: output, shape index: {1}]   ;;  %s5116_s7 = inlined_call_operand.vmem [shape: f32[1,128], index: 7, kind: input, shape index: {}]   ;;  %s5117_s8 = inlined_call_operand.vmem [shape: f32[8,128], index: 8, kind: output, shape index: {0}]  }
   0x1   :  { %v3364_v0 = vld [vmem:[%s5107_s4 + $0x1f8] sm:$0xff]  ;;  %v3369_v1 = vld [vmem:[%s5107_s4 + $0x1f0] sm:$0xff]  ;;  %258 = vmatprep.mubr.f32.mxu1 %v5118_v3  ;;  %187 = vmatprep.mubr.f32.mxu0 %v5118_v3  ;;  %v3382_v4 = vld [vmem:[%s5107_s4 + $0x1e8] sm:$0xff]  ;;  %vm283_vm3 = vcmask 1044484   ;;  %vm286_vm4 = vcmask 1045509   ;;  %vm289_vm5 = vcmask 1046534  }
   0x2   :  { %v3374_v2 = vld [vmem:[%s5107_s4 + $0x1d8] sm:$0xff]  ;;  %194 = vmatprep.subr.mxu1 %v3364_v0  ;;  %5253 = vst [vmem:[#allocation4_spill] sm:$0xff] %v3382_v4  ;;  %v3387_v5 = vld [vmem:[%s5107_s4 + $0x1d0] sm:$0xff]  ;;  %v3392_v6 = vld [vmem:[%s5107_s4 + $0x1e0] sm:$0xff]  ;;  %123 = vmatprep.subr.mxu0 %v3382_v4  ;;  %vm292_vm6 = vcmask 1047559   ;;  %vm294_vm7 = vcmask 130048  }
   0x3   :  { %195 = vmatpush1.msra.mxu1 %v3369_v1  ;;  %v3399_v7 = vld [vmem:[%s5107_s4 + $0x1b8] sm:$0xff]  ;;  %v3404_v8 = vld [vmem:[%s5107_s4 + $0x1c8] sm:$0xff]  ;;  %124 = vmatpush1.msra.mxu0 %v3392_v6  ;;  %v3411_v9 = vld [vmem:[%s5107_s4 + $0x1b0] sm:$0xff]  ;;  %vm3305_vm8 = vmmov 0  }
   0x4   :  { %196 = vmatprep.subr.mxu1 %v3374_v2  ;;  %v3416_v10 = vld [vmem:[%s5107_s4 + $0x1c0] sm:$0xff]  ;;  %v3421_v11 = vld [vmem:[%s5107_s4 + $0x1a8] sm:$0xff]  ;;  %125 = vmatprep.subr.mxu0 %v3404_v8  ;;  %v3428_v12 = vld [vmem:[%s5107_s4 + $0x198] sm:$0xff] }
   0x5   :  { %197 = vmatpush1.msra.mxu1 %v3387_v5  ;;  %v3433_v13 = vld [vmem:[%s5107_s4 + $0x1a0] sm:$0xff]  ;;  %126 = vmatpush1.msra.mxu0 %v3416_v10  ;;  %v3440_v14 = vld [vmem:[%s5107_s4 + $0x190] sm:$0xff]  ;;  %v3445_v15 = vld [vmem:[%s5107_s4 + $0x188] sm:$0xff] }
   0x6   :  { %198 = vmatprep.subr.mxu1 %v3399_v7  ;;  %127 = vmatprep.subr.mxu0 %v3421_v11  ;;  %v3452_v16 = vld [vmem:[%s5107_s4 + $0x178] sm:$0xff]  ;;  %v3457_v17 = vld [vmem:[%s5107_s4 + $0x180] sm:$0xff]  ;;  %v3464_v18 = vld [vmem:[%s5107_s4 + $0x170] sm:$0xff] }
   0x7   :  { %199 = vmatpush1.msra.mxu1 %v3411_v9  ;;  %128 = vmatpush1.msra.mxu0 %v3433_v13  ;;  %v3469_v19 = vld [vmem:[%s5107_s4 + $0x168] sm:$0xff]  ;;  %v3476_v20 = vld [vmem:[%s5107_s4 + $0x158] sm:$0xff]  ;;  %v3481_v21 = vld [vmem:[%s5107_s4 + $0x160] sm:$0xff] }
   0x8   :  { %200 = vmatprep.subr.mxu1 %v3428_v12  ;;  %129 = vmatprep.subr.mxu0 %v3445_v15  ;;  %v3488_v22 = vld [vmem:[%s5107_s4 + $0x150] sm:$0xff]  ;;  %v3493_v23 = vld [vmem:[%s5107_s4 + $0x148] sm:$0xff]  ;;  %v3500_v24 = vld [vmem:[%s5107_s4 + $0x138] sm:$0xff] }
   0x9   :  { %201 = vmatpush1.msra.mxu1 %v3440_v14  ;;  %130 = vmatpush1.msra.mxu0 %v3457_v17  ;;  %v3505_v25 = vld [vmem:[%s5107_s4 + $0x140] sm:$0xff]  ;;  %v3512_v26 = vld [vmem:[%s5107_s4 + $0x130] sm:$0xff]  ;;  %v3517_v27 = vld [vmem:[%s5107_s4 + $0x128] sm:$0xff] }
   0xa   :  { %202 = vmatprep.subr.mxu1 %v3452_v16  ;;  %131 = vmatprep.subr.mxu0 %v3469_v19  ;;  %v3524_v28 = vld [vmem:[%s5107_s4 + $0x118] sm:$0xff]  ;;  %v3529_v29 = vld [vmem:[%s5107_s4 + $0x120] sm:$0xff]  ;;  %v3536_v30 = vld [vmem:[%s5107_s4 + $0x110] sm:$0xff] }
   0xb   :  { %203 = vmatpush1.msra.mxu1 %v3464_v18  ;;  %132 = vmatpush1.msra.mxu0 %v3481_v21  ;;  %5254 = vst [vmem:[#allocation5_spill] sm:$0xff] %v3524_v28  ;;  %5255 = vst [vmem:[#allocation6_spill] sm:$0xff] %v3536_v30  ;;  %v3541_v31 = vld [vmem:[%s5107_s4 + $0x108] sm:$0xff]  ;;  %v3548_v32 = vld [vmem:[%s5107_s4 + $0xf8] sm:$0xff] }
   0xc   :  { %204 = vmatprep.subr.mxu1 %v3476_v20  ;;  %133 = vmatprep.subr.mxu0 %v3493_v23  ;;  %5256 = vst [vmem:[#allocation7_spill] sm:$0xff] %v3548_v32  ;;  %v3553_v33 = vld [vmem:[%s5107_s4 + $0x100] sm:$0xff]  ;;  %v3560_v34 = vld [vmem:[%s5107_s4 + $0xf0] sm:$0xff]  ;;  %v3565_v35 = vld [vmem:[%s5107_s4 + $0xe8] sm:$0xff] }
   0xd   :  { %205 = vmatpush1.msra.mxu1 %v3488_v22  ;;  %134 = vmatpush1.msra.mxu0 %v3505_v25  ;;  %5257 = vst [vmem:[#allocation8_spill] sm:$0xff] %v3560_v34  ;;  %v3572_v36 = vld [vmem:[%s5107_s4 + $0xd8] sm:$0xff]  ;;  %v3577_v37 = vld [vmem:[%s5107_s4 + $0xe0] sm:$0xff]  ;;  %v3584_v38 = vld [vmem:[%s5107_s4 + $0xd0] sm:$0xff] }
   0xe   :  { %206 = vmatprep.subr.mxu1 %v3500_v24  ;;  %135 = vmatprep.subr.mxu0 %v3517_v27  ;;  %5258 = vst [vmem:[#allocation9_spill] sm:$0xff] %v3572_v36  ;;  %5259 = vst [vmem:[#allocation10_spill] sm:$0xff] %v3584_v38  ;;  %v3589_v39 = vld [vmem:[%s5107_s4 + $0xc8] sm:$0xff]  ;;  %v3596_v40 = vld [vmem:[%s5107_s4 + $0xb8] sm:$0xff] }
   0xf   :  { %207 = vmatpush1.msra.mxu1 %v3512_v26  ;;  %136 = vmatpush1.msra.mxu0 %v3529_v29  ;;  %5260 = vst [vmem:[#allocation11_spill] sm:$0xff] %v3589_v39  ;;  %5261 = vst [vmem:[#allocation12_spill] sm:$0xff] %v3596_v40  ;;  %v3601_v41 = vld [vmem:[%s5107_s4 + $0xc0] sm:$0xff]  ;;  %v3608_v42 = vld [vmem:[%s5107_s4 + $0xb0] sm:$0xff] }
  0x10   :  { %208 = vmatprep.subr.mxu1 %v3524_v28  ;;  %137 = vmatprep.subr.mxu0 %v3541_v31  ;;  %5262 = vst [vmem:[#allocation13_spill] sm:$0xff] %v3601_v41  ;;  %5263 = vst [vmem:[#allocation14_spill] sm:$0xff] %v3608_v42  ;;  %v3613_v43 = vld [vmem:[%s5107_s4 + $0x98] sm:$0xff]  ;;  %v3618_v44 = vld [vmem:[%s5107_s4 + $0xa8] sm:$0xff] }
  0x11   :  { %209 = vmatpush1.msra.mxu1 %v3536_v30  ;;  %138 = vmatpush1.msra.mxu0 %v3553_v33  ;;  %5264 = vst [vmem:[#allocation15_spill] sm:$0xff] %v3613_v43  ;;  %5265 = vst [vmem:[#allocation16_spill] sm:$0xff] %v3618_v44  ;;  %v3625_v45 = vld [vmem:[%s5107_s4 + $0x90] sm:$0xff]  ;;  %v3630_v46 = vld [vmem:[%s5107_s4 + $0xa0] sm:$0xff] }
  0x12   :  { %210 = vmatprep.subr.mxu1 %v3548_v32  ;;  %139 = vmatprep.subr.mxu0 %v3565_v35  ;;  %5266 = vst [vmem:[#allocation17_spill] sm:$0xff] %v3625_v45  ;;  %5267 = vst [vmem:[#allocation18_spill] sm:$0xff] %v3630_v46  ;;  %v3635_v47 = vld [vmem:[%s5107_s4 + $0x78] sm:$0xff]  ;;  %v3642_v48 = vld [vmem:[%s5107_s4 + $0x88] sm:$0xff] }
  0x13   :  { %211 = vmatpush1.msra.mxu1 %v3560_v34  ;;  %140 = vmatpush1.msra.mxu0 %v3577_v37  ;;  %5268 = vst [vmem:[#allocation19_spill] sm:$0xff] %v3635_v47  ;;  %5269 = vst [vmem:[#allocation20_spill] sm:$0xff] %v3642_v48  ;;  %v3647_v49 = vld [vmem:[%s5107_s4 + $0x70] sm:$0xff]  ;;  %v3652_v50 = vld [vmem:[%s5107_s4 + $0x80] sm:$0xff] }
  0x14   :  { %212 = vmatprep.subr.mxu1 %v3572_v36  ;;  %141 = vmatprep.subr.mxu0 %v3589_v39  ;;  %5270 = vst [vmem:[#allocation21_spill] sm:$0xff] %v3647_v49  ;;  %5271 = vst [vmem:[#allocation22_spill] sm:$0xff] %v3652_v50  ;;  %v3659_v51 = vld [vmem:[%s5107_s4 + $0x58] sm:$0xff]  ;;  %v3664_v52 = vld [vmem:[%s5107_s4 + $0x68] sm:$0xff] }
  0x15   :  { %213 = vmatpush1.msra.mxu1 %v3584_v38  ;;  %142 = vmatpush1.msra.mxu0 %v3601_v41  ;;  %5272 = vst [vmem:[#allocation23_spill] sm:$0xff] %v3659_v51  ;;  %5273 = vst [vmem:[#allocation24_spill] sm:$0xff] %v3664_v52  ;;  %v3669_v53 = vld [vmem:[%s5107_s4 + $0x60] sm:$0xff]  ;;  %v116_v55 = vld [vmem:[%s5108_s0 + $0x8] sm:$0x1] }
  0x16   :  { %214 = vmatprep.subr.mxu1 %v3596_v40  ;;  %143 = vmatprep.subr.mxu0 %v3618_v44  ;;  %5274 = vst [vmem:[#allocation25_spill] sm:$0xff] %v3669_v53  ;;  %v115_v54 = vld [vmem:[%s5108_s0] sm:$0x1]  ;;  %v117_v56 = vld [vmem:[%s5108_s0 + $0x10] sm:$0x1]  ;;  %v3703_v61 = vld [vmem:[%s5107_s4 + $0x48] sm:$0xff] }
  0x17   :  { %215 = vmatpush1.msra.mxu1 %v3608_v42  ;;  %144 = vmatpush1.msra.mxu0 %v3630_v46  ;;  %v118_v57 = vld [vmem:[%s5108_s0 + $0x18] sm:$0x1]  ;;  %v119_v58 = vld [vmem:[%s5108_s0 + $0x20] sm:$0x1]  ;;  %v120_v59 = vld [vmem:[%s5108_s0 + $0x28] sm:$0x1] }
  0x18   :  { %216 = vmatprep.subr.mxu1 %v3613_v43  ;;  %145 = vmatprep.subr.mxu0 %v3642_v48  ;;  %v3698_v60 = vld [vmem:[%s5107_s4 + $0x50] sm:$0xff]  ;;  %5276 = vst [vmem:[#allocation27_spill] sm:$0xff] %v3703_v61  ;;  %v273_v63 = vrot.slane %v116_v55, 7  ;;  %v276_v3 = vrot.slane %v117_v56, 6  ;;  %v282_v43 = vrot.slane %v119_v58, 4  ;;  %v3730_v56 = vld [vmem:[%s5107_s4 + $0x28] sm:$0xff] }
  0x19   :  { %217 = vmatpush1.msra.mxu1 %v3625_v45  ;;  %146 = vmatpush1.msra.mxu0 %v3652_v50  ;;  %5275 = vst [vmem:[#allocation26_spill] sm:$0xff] %v3698_v60  ;;  %v121_v62 = vld [vmem:[%s5108_s0 + $0x30] sm:$0x1]  ;;  %v3718_v45 = vld [vmem:[%s5107_s4 + $0x40] sm:$0xff]  ;;  %v279_v50 = vrot.slane %v118_v57, 5  ;;  %5280 = vst [vmem:[#allocation31_spill] sm:$0xff] %v3730_v56 }
  0x1a   :  { %218 = vmatprep.subr.mxu1 %v3635_v47  ;;  %147 = vmatprep.subr.mxu0 %v3664_v52  ;;  %v3713_v47 = vld [vmem:[%s5107_s4 + $0x38] sm:$0xff]  ;;  %5278 = vst [vmem:[#allocation29_spill] sm:$0xff] %v3718_v45  ;;  %v3725_v55 = vld [vmem:[%s5107_s4 + $0x30] sm:$0xff]  ;;  %v275_v58 = vsel %vm274_vm0, %v273_v63, %v115_v54  ;;  %v288_v54 = vrot.slane %v121_v62, 2  ;;  %v3759_v63 = vld [vmem:[%s5107_s4 + $0x8] sm:$0xff] }
  0x1b   :  { %219 = vmatpush1.msra.mxu1 %v3647_v49  ;;  %5277 = vst [vmem:[#allocation28_spill] sm:$0xff] %v3713_v47  ;;  %148 = vmatpush1.msra.mxu0 %v3669_v53  ;;  %5279 = vst [vmem:[#allocation30_spill] sm:$0xff] %v3725_v55  ;;  %v122_v57 = vld [vmem:[%s5108_s0 + $0x38] sm:$0x1]  ;;  %v3746_v53 = vld [vmem:[%s5107_s4 + $0x20] sm:$0xff]  ;;  %v278_v52 = vsel %vm277_vm1, %v276_v3, %v275_v58 }
  0x1c   :  { %220 = vmatprep.subr.mxu1 %v3659_v51  ;;  %v285_v51 = vrot.slane %v120_v59, 3  ;;  %149 = vmatprep.subr.mxu0 %v3703_v61  ;;  %v3741_v49 = vld [vmem:[%s5107_s4 + $0x18] sm:$0xff]  ;;  %5282 = vst [vmem:[#allocation33_spill] sm:$0xff] %v3746_v53  ;;  %v3754_v59 = vld [vmem:[%s5107_s4 + $0x10] sm:$0xff]  ;;  %5284 = vst [vmem:[#allocation35_spill] sm:$0xff] %v3759_v63 }
  0x1d   :  { %221 = vmatpush1.msra.mxu1 %v3698_v60  ;;  %5281 = vst [vmem:[#allocation32_spill] sm:$0xff] %v3741_v49  ;;  %150 = vmatpush1.msra.mxu0 %v3718_v45  ;;  %5283 = vst [vmem:[#allocation34_spill] sm:$0xff] %v3754_v59  ;;  %v281_v60 = vsel %vm280_vm2, %v279_v50, %v278_v52  ;;  %v36_v3 = vld [vmem:[%s5109_s1] sm:$0xff]  ;;  %v3770_v62 = vld [vmem:[%s5110_s3 + $0x28] sm:$0xff] }
  0x1e   :  { %222 = vmatprep.subr.mxu1 %v3713_v47  ;;  %151 = vmatprep.subr.mxu0 %v3730_v56  ;;  %5285 = vst [vmem:[#allocation36_spill] sm:$0xff] %v3770_v62  ;;  %v284_v58 = vsel %vm283_vm3, %v282_v43, %v281_v60  ;;  %v291_v47 = vrot.slane %v122_v57, 1  ;;  %v3778_v50 = vld [vmem:[%s5110_s3 + $0x20] sm:$0xff]  ;;  %v3791_v43 = vld [vmem:[%s5110_s3 + $0x8] sm:$0xff] }
  0x1f   :  { %223 = vmatpush1.msra.mxu1 %v3725_v55  ;;  %152 = vmatpush1.msra.mxu0 %v3746_v53  ;;  %v3783_v52 = vld [vmem:[%s5107_s4] sm:$0xff]  ;;  %v287_v55 = vsel %vm286_vm4, %v285_v51, %v284_v58  ;;  %v3806_v58 = vld [vmem:[%s5110_s3 + $0x38] sm:$0xff] }
  0x20   :  { %224 = vmatprep.subr.mxu1 %v3741_v49  ;;  %5286 = vst [vmem:[#allocation37_spill] sm:$0xff] %v3783_v52  ;;  %153 = vmatprep.subr.mxu0 %v3759_v63  ;;  %v290_v60 = vsel %vm289_vm5, %v288_v54, %v287_v55  ;;  %v3798_v57 = vld [vmem:[%s5110_s3] sm:$0xff]  ;;  %v3812_v55 = vld [vmem:[%s5110_s3 + $0x30] sm:$0xff]  ;;  %v5287_v54 = vmov 0.0  }
  0x21   :  { %225 = vmatpush1.msra.mxu1 %v3754_v59  ;;  %154 = vmatpush1.msra.mxu0 %v3783_v52  ;;  %v293_v51 = vsel %vm292_vm6, %v291_v47, %v290_v60  ;;  %v3819_v47 = vld [vmem:[%s5110_s3 + $0x18] sm:$0xff] }
  0x22   :  { %259 = vmatmul.mubr.f32.vlgmr.msra.gmra.mxu1 %v36_v3  ;;  %325 = vmatprep.subr.mxu1 %v3770_v62  ;;  %v5288_v60 = vld [vmem:[#allocation15_spill] sm:$0xff] }
  0x23   :  { %326 = vmatpush1.msra.mxu1 %v3778_v50  ;;  %188 = vmatmul.mubr.f32.vlgmr.msra.gmra.mxu0 %v36_v3  ;;  %v3826_v3 = vld [vmem:[%s5110_s3 + $0x10] sm:$0xff] }
  0x24   :  { %327 = vmatprep.subr.mxu1 %v3791_v43  ;;  %361 = vmatprep.mubr.f32.mxu1 %v5287_v54 }
  0x25   :  { %328 = vmatpush1.msra.mxu1 %v3798_v57  ;;  %496 = vmatprep.subr.mxu0 %v3382_v4 }
  0x26   :  { %3009 = vmatmul.mubr.msk.f32.vlgmr.msra.gmra.mxu1 %vm294_vm7, %v293_v51  ;;  %396 = vmatprep.subr.mxu1 %v3806_v58 }
  0x27   :  { %397 = vmatpush1.msra.mxu1 %v3812_v55  ;;  %432 = vmatprep.mubr.f32.mxu1 %v5287_v54 }
  0x28   :  { %398 = vmatprep.subr.mxu1 %v3819_v47  ;;  %497 = vmatpush1.msra.mxu0 %v3392_v6 }
  0x29   :  { %399 = vmatpush1.msra.mxu1 %v3826_v3  ;;  %498 = vmatprep.subr.mxu0 %v3404_v8 }
  0x2a   :  { %3010 = vmatmul.mubr.msk.f32.vlgmr.msra.gmra.mxu1 %vm294_vm7, %v293_v51  ;;  %567 = vmatprep.subr.mxu1 %v3364_v0  ;;  %v5289_v51 = vld [vmem:[#allocation22_spill] sm:$0xff] }
  0x2b   :  { %568 = vmatpush1.msra.mxu1 %v3369_v1  ;;  %499 = vmatpush1.msra.mxu0 %v3416_v10 }
  0x2c   :  { %569 = vmatprep.subr.mxu1 %v3374_v2  ;;  %500 = vmatprep.subr.mxu0 %v3421_v11 }
  0x2d   :  { %570 = vmatpush1.msra.mxu1 %v3387_v5  ;;  %501 = vmatpush1.msra.mxu0 %v3433_v13 }
  0x2e   :  { %571 = vmatprep.subr.mxu1 %v3399_v7  ;;  %502 = vmatprep.subr.mxu0 %v3445_v15 }
  0x2f   :  { %572 = vmatpush1.msra.mxu1 %v3411_v9  ;;  %503 = vmatpush1.msra.mxu0 %v3457_v17 }
  0x30   :  { %573 = vmatprep.subr.mxu1 %v3428_v12  ;;  %504 = vmatprep.subr.mxu0 %v3469_v19 }
  0x31   :  { %574 = vmatpush1.msra.mxu1 %v3440_v14  ;;  %505 = vmatpush1.msra.mxu0 %v3481_v21 }
  0x32   :  { %575 = vmatprep.subr.mxu1 %v3452_v16  ;;  %506 = vmatprep.subr.mxu0 %v3493_v23 }
  0x33   :  { %576 = vmatpush1.msra.mxu1 %v3464_v18  ;;  %507 = vmatpush1.msra.mxu0 %v3505_v25 }
  0x34   :  { %577 = vmatprep.subr.mxu1 %v3476_v20  ;;  %508 = vmatprep.subr.mxu0 %v3517_v27 }
  0x35   :  { %578 = vmatpush1.msra.mxu1 %v3488_v22  ;;  %509 = vmatpush1.msra.mxu0 %v3529_v29 }
  0x36   :  { %579 = vmatprep.subr.mxu1 %v3500_v24  ;;  %510 = vmatprep.subr.mxu0 %v3541_v31 }
  0x37   :  { %580 = vmatpush1.msra.mxu1 %v3512_v26  ;;  %511 = vmatpush1.msra.mxu0 %v3553_v33 }
  0x38   :  { %581 = vmatprep.subr.mxu1 %v3524_v28  ;;  %512 = vmatprep.subr.mxu0 %v3565_v35 }
  0x39   :  { %582 = vmatpush1.msra.mxu1 %v3536_v30  ;;  %513 = vmatpush1.msra.mxu0 %v3577_v37 }
  0x3a   :  { %583 = vmatprep.subr.mxu1 %v3548_v32  ;;  %514 = vmatprep.subr.mxu0 %v3589_v39  ;;  %v5292_v32 = vld [vmem:[#allocation19_spill] sm:$0xff] }
  0x3b   :  { %584 = vmatpush1.msra.mxu1 %v3560_v34  ;;  %515 = vmatpush1.msra.mxu0 %v3601_v41  ;;  %v5290_v34 = vld [vmem:[#allocation17_spill] sm:$0xff] }
  0x3c   :  { %585 = vmatprep.subr.mxu1 %v3572_v36  ;;  %516 = vmatprep.subr.mxu0 %v3618_v44  ;;  %v5291_v36 = vld [vmem:[#allocation24_spill] sm:$0xff]  ;;  %v5294_v44 = vld [vmem:[#allocation21_spill] sm:$0xff] }
  0x3d   :  { %586 = vmatpush1.msra.mxu1 %v3584_v38  ;;  %517 = vmatpush1.msra.mxu0 %v3630_v46  ;;  %v5293_v38 = vld [vmem:[#allocation25_spill] sm:$0xff] }
  0x3e   :  { %587 = vmatprep.subr.mxu1 %v3596_v40  ;;  %518 = vmatprep.subr.mxu0 %v3642_v48  ;;  %v5295_v40 = vld [vmem:[#allocation23_spill] sm:$0xff] }
  0x3f   :  { %588 = vmatpush1.msra.mxu1 %v3608_v42  ;;  %519 = vmatpush1.msra.mxu0 %v5289_v51  ;;  %v5296_v42 = vld [vmem:[#allocation26_spill] sm:$0xff] }
  0x40   :  { %589 = vmatprep.subr.mxu1 %v5288_v60  ;;  %520 = vmatprep.subr.mxu0 %v5291_v36  ;;  %v5297_v60 = vld [vmem:[#allocation28_spill] sm:$0xff] }
  0x41   :  { %590 = vmatpush1.msra.mxu1 %v5290_v34  ;;  %521 = vmatpush1.msra.mxu0 %v5293_v38  ;;  %v5298_v34 = vld [vmem:[#allocation30_spill] sm:$0xff] }
  0x42   :  { %591 = vmatprep.subr.mxu1 %v5292_v32  ;;  %522 = vmatprep.subr.mxu0 %v3703_v61 }
  0x43   :  { %592 = vmatpush1.msra.mxu1 %v5294_v44  ;;  %523 = vmatpush1.msra.mxu0 %v3718_v45 }
  0x44   :  { %593 = vmatprep.subr.mxu1 %v5295_v40  ;;  %524 = vmatprep.subr.mxu0 %v3730_v56 }
  0x45   :  { %594 = vmatpush1.msra.mxu1 %v5296_v42  ;;  %525 = vmatpush1.msra.mxu0 %v3746_v53 }
  0x46   :  { %595 = vmatprep.subr.mxu1 %v5297_v60  ;;  %526 = vmatprep.subr.mxu0 %v3759_v63  ;;  %v440_v60 = vlaneseq }
  0x47   :  { %596 = vmatpush1.msra.mxu1 %v5298_v34  ;;  %527 = vmatpush1.msra.mxu0 %v3783_v52 }
  0x48   :  { %597 = vmatprep.subr.mxu1 %v3741_v49  ;;  %560 = vmatprep.mubr.f32.mxu0 %v5287_v54  ;;  %v441_v42 = vshrl.u32 %v440_v60, 7  ;;  %v114_v49 = vld [vmem:[%s5111_s5] sm:$0xf] }
  0x49   :  { %598 = vmatpush1.msra.mxu1 %v3754_v59  ;;  %631 = vmatprep.mubr.f32.mxu1 %v5287_v54 }
  0x4a   :  { %690 = vmatprep.subr.mxu1 %v3770_v62  ;;  %840 = vmatprep.subr.mxu0 %v3382_v4  ;;  %v442_v40 = vsub.s32 0, %v441_v42  ;;  %v446_v63 = vsub.s32 1, %v441_v42  ;;  %v454_v51 = vsub.s32 3, %v441_v42 }
  0x4c   :  { %v3904_v44 = vrot.slane %v114_v49, %v442_v40  ;;  %v3906_v32 = vrot.slane %v114_v49, %v446_v63  ;;  %v3910_v41 = vrot.slane %v114_v49, %v454_v51 }
  0xe2   :  { %v260_v34 = vpop.f32.mrf.mxu1 }
  0xe3   :  { %v189_v53 = vpop.f32.mrf.mxu0 }
  0xe4   :  { %v262_v52 = vpop.f32.mrf.mxu1 }
  0xe5   :  { %v191_v62 = vpop.f32.mrf.mxu0 }
  0xe6   :  { %v363_v59 = vpop.f32.mrf.mxu1 }
  0xe7   :  { %v364_v56 = vadd.f32 %v363_v59, %v189_v53  ;;  %v450_v53 = vsub.s32 2, %v441_v42  ;;  %v489_v42 = vld [vmem:[%s5108_s0 + $0x9] sm:$0x1] }
  0xe8   :  { %v365_v45 = vpop.f32.mrf.mxu1  ;;  %v646_v51 = vrot.slane %v489_v42, 7 }
  0xe9   :  { %v460_v4 = vadd.f32 %v3904_v44, %v364_v56  ;;  %v366_v60 = vadd.f32 %v365_v45, %v191_v62  ;;  %v3913_v30 = vrot.slane %v114_v49, %v450_v53 }
  0xea   :  { %v434_v61 = vpop.f32.mrf.mxu1 }
  0xeb   :  { %v3011_v38 = vmul.f32 -1.442695, %v460_v4  ;;  %v461_v36 = vadd.f32 %v3906_v32, %v366_v60  ;;  %v435_v63 = vadd.f32 %v434_v61, %v260_v34  ;;  %v38_v34 = vld [vmem:[%s5112_s2] sm:$0xff] }
  0xec   :  { %v436_v46 = vpop.f32.mrf.mxu1 }
  0xed   :  { %3104 = vpow2.f32 %v3011_v38  ;;  %v3012_v48 = vmul.f32 -1.442695, %v461_v36  ;;  %v437_v40 = vadd.f32 %v436_v46, %v262_v52  ;;  %v462_v4 = vadd.f32 %v3913_v30, %v435_v63  ;;  %v490_v52 = vld [vmem:[%s5108_s0 + $0x11] sm:$0x1] }
  0xef   :  { %3106 = vpow2.f32 %v3012_v48  ;;  %v463_v59 = vadd.f32 %v3910_v41, %v437_v40 }
  0xf1   :  { %v3013_v56 = vmul.f32 -1.442695, %v463_v59  ;;  %v488_v59 = vld [vmem:[%s5108_s0 + $0x1] sm:$0x1] }
  0xf3   :  { %3108 = vpow2.f32 %v3013_v56  ;;  %v491_v56 = vld [vmem:[%s5108_s0 + $0x19] sm:$0x1] }
  0xfa   :  { %v3105_v45 = vpop.eup %3104 }
  0xfb   :  { %v467_v62 = vadd.f32 1.0, %v3105_v45  ;;  %v648_v45 = vrot.slane %v490_v52, 6 }
  0xfc   :  { %v3107_v60 = vpop.eup %3106 }
  0xfd   :  { %3110 = vrcp.f32 %v467_v62  ;;  %v473_v36 = vadd.f32 1.0, %v3107_v60  ;;  %v492_v62 = vld [vmem:[%s5108_s0 + $0x21] sm:$0x1]  ;;  %v650_v60 = vrot.slane %v491_v56, 5 }
  0xfe   :  { %3112 = vtanh.f32 %v462_v4  ;;  %v647_v4 = vsel %vm274_vm0, %v646_v51, %v488_v59  ;;  %v652_v42 = vrot.slane %v492_v62, 4  ;;  %v5299_v62 = vld [vmem:[#allocation6_spill] sm:$0xff] }
  0xff   :  { %3114 = vrcp.f32 %v473_v36  ;;  %v649_v36 = vsel %vm277_vm1, %v648_v45, %v647_v4 }
 0x100   :  { %v3109_v38 = vpop.eup %3108 }
 0x101   :  { %v480_v61 = vadd.f32 1.0, %v3109_v38  ;;  %v493_v38 = vld [vmem:[%s5108_s0 + $0x29] sm:$0x1] }
 0x103   :  { %3116 = vrcp.f32 %v480_v61  ;;  %v495_v61 = vld [vmem:[%s5108_s0 + $0x39] sm:$0x1] }
 0x104   :  { %v658_v59 = vrot.slane %v495_v61, 1  ;;  %v5308_v61 = vld [vmem:[#allocation22_spill] sm:$0xff] }
 0x10a   :  { %v3111_v46 = vpop.eup %3110 }
 0x10b   :  { %v3113_v48 = vpop.eup %3112 }
 0x10c   :  { %v3115_v49 = vpop.eup %3114  ;;  %v484_v53 = vmul.f32 %v3113_v48, %v3111_v46  ;;  %v651_v46 = vsel %vm280_vm2, %v650_v60, %v649_v36  ;;  %v654_v48 = vrot.slane %v493_v38, 3  ;;  %v5300_v60 = vld [vmem:[#allocation13_spill] sm:$0xff]  ;;  %v5301_v36 = vld [vmem:[#allocation7_spill] sm:$0xff]  ;;  %v5302_v38 = vld [vmem:[#allocation16_spill] sm:$0xff] }
 0x10d   :  { %v483_v40 = vmul.f32 %v3115_v49, %v38_v34  ;;  %v494_v34 = vld [vmem:[%s5108_s0 + $0x31] sm:$0x1]  ;;  %v653_v49 = vsel %vm283_vm3, %v652_v42, %v651_v46  ;;  %v5303_v42 = vld [vmem:[#allocation8_spill] sm:$0xff] }
 0x10e   :  { %v656_v52 = vrot.slane %v494_v34, 2  ;;  %v655_v51 = vsel %vm286_vm4, %v654_v48, %v653_v49  ;;  %v5304_v46 = vld [vmem:[#allocation18_spill] sm:$0xff]  ;;  %v5305_v34 = vld [vmem:[#allocation9_spill] sm:$0xff]  ;;  %v5306_v48 = vld [vmem:[#allocation20_spill] sm:$0xff] }
 0x10f   :  { %v3928_v63 = vadd.f32 %v484_v53, %v483_v40  ;;  %v5307_v49 = vld [vmem:[#allocation10_spill] sm:$0xff] }
 0x110   :  { %v3117_v40 = vpop.eup %3116  ;;  %v657_v45 = vsel %vm289_vm5, %v656_v52, %v655_v51  ;;  %v5309_v52 = vld [vmem:[#allocation12_spill] sm:$0xff] }
 0x111   :  { %3118 = vtanh.f32 %v3928_v63  ;;  %v659_v4 = vsel %vm292_vm6, %v658_v59, %v657_v45  ;;  %v5310_v51 = vld [vmem:[#allocation24_spill] sm:$0xff]  ;;  %v5313_v59 = vld [vmem:[#allocation15_spill] sm:$0xff]  ;;  %v5315_v45 = vld [vmem:[#allocation17_spill] sm:$0xff] }
 0x11e   :  { %v3119_v53 = vpop.eup %3118 }
 0x11f   :  { %v487_v56 = vmul.f32 %v3119_v53, %v3117_v40  ;;  %v5311_v40 = vld [vmem:[#allocation14_spill] sm:$0xff]  ;;  %v5312_v53 = vld [vmem:[#allocation25_spill] sm:$0xff] }
 0x121   :  { %561 = vmatmul.mubr.f32.vlgmr.msra.gmra.mxu0 %v487_v56  ;;  %632 = vmatmul.mubr.f32.vlgmr.msra.gmra.mxu1 %v487_v56  ;;  %v5314_v56 = vld [vmem:[#allocation27_spill] sm:$0xff] }
 0x122   :  { %691 = vmatpush1.msra.mxu1 %v3778_v50  ;;  %726 = vmatprep.mubr.f32.mxu1 %v5287_v54 }
 0x123   :  { %692 = vmatprep.subr.mxu1 %v3791_v43  ;;  %841 = vmatpush1.msra.mxu0 %v3392_v6 }
 0x124   :  { %693 = vmatpush1.msra.mxu1 %v3798_v57  ;;  %842 = vmatprep.subr.mxu0 %v3404_v8 }
 0x125   :  { %3014 = vmatmul.mubr.msk.f32.vlgmr.msra.gmra.mxu1 %vm294_vm7, %v659_v4  ;;  %761 = vmatprep.subr.mxu1 %v3806_v58 }
 0x126   :  { %762 = vmatpush1.msra.mxu1 %v3812_v55  ;;  %797 = vmatprep.mubr.f32.mxu1 %v5287_v54 }
 0x127   :  { %763 = vmatprep.subr.mxu1 %v3819_v47  ;;  %843 = vmatpush1.msra.mxu0 %v3416_v10 }
 0x128   :  { %764 = vmatpush1.msra.mxu1 %v3826_v3  ;;  %844 = vmatprep.subr.mxu0 %v3421_v11 }
 0x129   :  { %3015 = vmatmul.mubr.msk.f32.vlgmr.msra.gmra.mxu1 %vm294_vm7, %v659_v4  ;;  %911 = vmatprep.subr.mxu1 %v3364_v0  ;;  %v5316_v4 = vld [vmem:[#allocation29_spill] sm:$0xff] }
 0x12a   :  { %912 = vmatpush1.msra.mxu1 %v3369_v1  ;;  %845 = vmatpush1.msra.mxu0 %v3433_v13 }
 0x12b   :  { %913 = vmatprep.subr.mxu1 %v3374_v2  ;;  %846 = vmatprep.subr.mxu0 %v3445_v15 }
 0x12c   :  { %914 = vmatpush1.msra.mxu1 %v3387_v5  ;;  %847 = vmatpush1.msra.mxu0 %v3457_v17 }
 0x12d   :  { %915 = vmatprep.subr.mxu1 %v3399_v7  ;;  %848 = vmatprep.subr.mxu0 %v3469_v19 }
 0x12e   :  { %916 = vmatpush1.msra.mxu1 %v3411_v9  ;;  %849 = vmatpush1.msra.mxu0 %v3481_v21 }
 0x12f   :  { %917 = vmatprep.subr.mxu1 %v3428_v12  ;;  %850 = vmatprep.subr.mxu0 %v3493_v23 }
 0x130   :  { %918 = vmatpush1.msra.mxu1 %v3440_v14  ;;  %851 = vmatpush1.msra.mxu0 %v3505_v25 }
 0x131   :  { %919 = vmatprep.subr.mxu1 %v3452_v16  ;;  %852 = vmatprep.subr.mxu0 %v3517_v27 }
 0x132   :  { %920 = vmatpush1.msra.mxu1 %v3464_v18  ;;  %853 = vmatpush1.msra.mxu0 %v3529_v29 }
 0x133   :  { %921 = vmatprep.subr.mxu1 %v3476_v20  ;;  %854 = vmatprep.subr.mxu0 %v3541_v31 }
 0x134   :  { %922 = vmatpush1.msra.mxu1 %v3488_v22  ;;  %855 = vmatpush1.msra.mxu0 %v3553_v33 }
 0x135   :  { %923 = vmatprep.subr.mxu1 %v3500_v24  ;;  %856 = vmatprep.subr.mxu0 %v3565_v35 }
 0x136   :  { %924 = vmatpush1.msra.mxu1 %v3512_v26  ;;  %857 = vmatpush1.msra.mxu0 %v3577_v37 }
 0x137   :  { %925 = vmatprep.subr.mxu1 %v3524_v28  ;;  %858 = vmatprep.subr.mxu0 %v3589_v39 }
 0x138   :  { %926 = vmatpush1.msra.mxu1 %v5299_v62  ;;  %859 = vmatpush1.msra.mxu0 %v5300_v60 }
 0x139   :  { %927 = vmatprep.subr.mxu1 %v5301_v36  ;;  %860 = vmatprep.subr.mxu0 %v5302_v38 }
 0x13a   :  { %928 = vmatpush1.msra.mxu1 %v5303_v42  ;;  %861 = vmatpush1.msra.mxu0 %v5304_v46 }
 0x13b   :  { %929 = vmatprep.subr.mxu1 %v5305_v34  ;;  %862 = vmatprep.subr.mxu0 %v5306_v48  ;;  %v5317_v48 = vld [vmem:[#allocation19_spill] sm:$0xff] }
 0x13c   :  { %930 = vmatpush1.msra.mxu1 %v5307_v49  ;;  %863 = vmatpush1.msra.mxu0 %v5308_v61  ;;  %v5318_v49 = vld [vmem:[#allocation31_spill] sm:$0xff]  ;;  %v5319_v61 = vld [vmem:[#allocation21_spill] sm:$0xff] }
 0x13d   :  { %931 = vmatprep.subr.mxu1 %v5309_v52  ;;  %864 = vmatprep.subr.mxu0 %v5310_v51  ;;  %v5320_v52 = vld [vmem:[#allocation33_spill] sm:$0xff]  ;;  %v5321_v51 = vld [vmem:[#allocation23_spill] sm:$0xff] }
 0x13e   :  { %932 = vmatpush1.msra.mxu1 %v5311_v40  ;;  %865 = vmatpush1.msra.mxu0 %v5312_v53  ;;  %v5322_v40 = vld [vmem:[#allocation35_spill] sm:$0xff]  ;;  %v5323_v53 = vld [vmem:[#allocation26_spill] sm:$0xff] }
 0x13f   :  { %933 = vmatprep.subr.mxu1 %v5313_v59  ;;  %866 = vmatprep.subr.mxu0 %v5314_v56  ;;  %v5324_v59 = vld [vmem:[#allocation37_spill] sm:$0xff]  ;;  %v5325_v56 = vld [vmem:[#allocation28_spill] sm:$0xff] }
 0x140   :  { %934 = vmatpush1.msra.mxu1 %v5315_v45  ;;  %867 = vmatpush1.msra.mxu0 %v5316_v4  ;;  %v5326_v4 = vld [vmem:[#allocation30_spill] sm:$0xff] }
 0x141   :  { %935 = vmatprep.subr.mxu1 %v5317_v48  ;;  %868 = vmatprep.subr.mxu0 %v5318_v49  ;;  %v5327_v49 = vld [vmem:[#allocation32_spill] sm:$0xff] }
 0x142   :  { %936 = vmatpush1.msra.mxu1 %v5319_v61  ;;  %869 = vmatpush1.msra.mxu0 %v5320_v52  ;;  %v5328_v61 = vld [vmem:[#allocation4_spill] sm:$0xff]  ;;  %v5329_v52 = vld [vmem:[#allocation34_spill] sm:$0xff] }
 0x143   :  { %937 = vmatprep.subr.mxu1 %v5321_v51  ;;  %870 = vmatprep.subr.mxu0 %v5322_v40  ;;  %v5330_v51 = vld [vmem:[#allocation36_spill] sm:$0xff] }
 0x144   :  { %938 = vmatpush1.msra.mxu1 %v5323_v53  ;;  %871 = vmatpush1.msra.mxu0 %v5324_v59 }
 0x145   :  { %939 = vmatprep.subr.mxu1 %v5325_v56  ;;  %904 = vmatprep.mubr.f32.mxu0 %v5287_v54 }
 0x146   :  { %940 = vmatpush1.msra.mxu1 %v5326_v4  ;;  %975 = vmatprep.mubr.f32.mxu1 %v5287_v54 }
 0x147   :  { %941 = vmatprep.subr.mxu1 %v5327_v49  ;;  %1184 = vmatprep.subr.mxu0 %v5328_v61 }
 0x148   :  { %942 = vmatpush1.msra.mxu1 %v5329_v52 }
 0x149   :  { %1034 = vmatprep.subr.mxu1 %v5330_v51 }
 0x1e1   :  { %v633_v40 = vpop.f32.mrf.mxu1  ;;  %v562_v53 = vpop.f32.mrf.mxu0 }
 0x1e3   :  { %v635_v48 = vpop.f32.mrf.mxu1  ;;  %v564_v56 = vpop.f32.mrf.mxu0 }
 0x1e5   :  { %v728_v59 = vpop.f32.mrf.mxu1 }
 0x1e6   :  { %v729_v45 = vadd.f32 %v728_v59, %v562_v53 }
 0x1e7   :  { %v730_v34 = vpop.f32.mrf.mxu1 }
 0x1e8   :  { %v804_v46 = vadd.f32 %v729_v45, %v3904_v44  ;;  %v731_v4 = vadd.f32 %v730_v34, %v564_v56 }
 0x1e9   :  { %v799_v42 = vpop.f32.mrf.mxu1 }
 0x1ea   :  { %v3016_v38 = vmul.f32 -1.442695, %v804_v46  ;;  %v805_v49 = vadd.f32 %v731_v4, %v3906_v32  ;;  %v800_v60 = vadd.f32 %v799_v42, %v633_v40  ;;  %v835_v40 = vld [vmem:[%s5108_s0 + $0x1a] sm:$0x1] }
 0x1eb   :  { %v801_v36 = vpop.f32.mrf.mxu1  ;;  %v994_v4 = vrot.slane %v835_v40, 5 }
 0x1ec   :  { %3120 = vpow2.f32 %v3016_v38  ;;  %v3017_v61 = vmul.f32 -1.442695, %v805_v49  ;;  %v802_v52 = vadd.f32 %v801_v36, %v635_v48  ;;  %v806_v53 = vadd.f32 %v800_v60, %v3913_v30  ;;  %v833_v38 = vld [vmem:[%s5108_s0 + $0xa] sm:$0x1]  ;;  %v834_v60 = vld [vmem:[%s5108_s0 + $0x12] sm:$0x1] }
 0x1ed   :  { %v992_v56 = vrot.slane %v834_v60, 6 }
 0x1ee   :  { %3122 = vpow2.f32 %v3017_v61  ;;  %v807_v51 = vadd.f32 %v802_v52, %v3910_v41 }
 0x1f0   :  { %v3018_v62 = vmul.f32 -1.442695, %v807_v51 }
 0x1f2   :  { %3124 = vpow2.f32 %v3018_v62 }
 0x1f9   :  { %v3121_v39 = vpop.eup %3120 }
 0x1fa   :  { %v811_v59 = vadd.f32 1.0, %v3121_v39  ;;  %v990_v39 = vrot.slane %v833_v38, 7 }
 0x1fb   :  { %v3123_v28 = vpop.eup %3122 }
 0x1fc   :  { %3126 = vrcp.f32 %v811_v59  ;;  %v817_v34 = vadd.f32 1.0, %v3123_v28  ;;  %v832_v28 = vld [vmem:[%s5108_s0 + $0x2] sm:$0x1] }
 0x1fd   :  { %3128 = vtanh.f32 %v806_v53  ;;  %v991_v45 = vsel %vm274_vm0, %v990_v39, %v832_v28  ;;  %v837_v53 = vld [vmem:[%s5108_s0 + $0x2a] sm:$0x1] }
 0x1fe   :  { %3130 = vrcp.f32 %v817_v34  ;;  %v993_v61 = vsel %vm277_vm1, %v992_v56, %v991_v45  ;;  %v998_v38 = vrot.slane %v837_v53, 3  ;;  %v4148_v56 = vld [vmem:[%s5107_s4 + $0x1e8] sm:$0xff]  ;;  %v5362_v45 = vld [vmem:[#allocation34_spill] sm:$0xff] }
 0x1ff   :  { %v3125_v46 = vpop.eup %3124  ;;  %v995_v34 = vsel %vm280_vm2, %v994_v4, %v993_v61 }
 0x200   :  { %v824_v42 = vadd.f32 1.0, %v3125_v46  ;;  %v838_v46 = vld [vmem:[%s5108_s0 + $0x32] sm:$0x1] }
 0x202   :  { %3132 = vrcp.f32 %v824_v42 }
 0x209   :  { %v3127_v36 = vpop.eup %3126 }
 0x20a   :  { %v3129_v48 = vpop.eup %3128 }
 0x20b   :  { %v3131_v49 = vpop.eup %3130  ;;  %v828_v52 = vmul.f32 %v3129_v48, %v3127_v36  ;;  %v839_v48 = vld [vmem:[%s5108_s0 + $0x3a] sm:$0x1] }
 0x20c   :  { %v827_v62 = vmul.f32 %v3131_v49, %v3928_v63  ;;  %v836_v63 = vld [vmem:[%s5108_s0 + $0x22] sm:$0x1]  ;;  %v1000_v49 = vrot.slane %v838_v46, 2 }
 0x20d   :  { %v996_v59 = vrot.slane %v836_v63, 4  ;;  %v5363_v63 = vld [vmem:[#allocation36_spill] sm:$0xff] }
 0x20e   :  { %v4045_v51 = vadd.f32 %v828_v52, %v827_v62  ;;  %v1002_v62 = vrot.slane %v839_v48, 1 }
 0x20f   :  { %v997_v36 = vsel %vm283_vm3, %v996_v59, %v995_v34  ;;  %v3133_v60 = vpop.eup %3132 }
 0x210   :  { %3134 = vtanh.f32 %v4045_v51  ;;  %v999_v42 = vsel %vm286_vm4, %v998_v38, %v997_v36 }
 0x211   :  { %v1001_v28 = vsel %vm289_vm5, %v1000_v49, %v999_v42 }
 0x212   :  { %v1003_v40 = vsel %vm292_vm6, %v1002_v62, %v1001_v28 }
 0x21d   :  { %v3135_v39 = vpop.eup %3134 }
 0x21e   :  { %v831_v52 = vmul.f32 %v3135_v39, %v3133_v60 }
 0x220   :  { %905 = vmatmul.mubr.f32.vlgmr.msra.gmra.mxu0 %v831_v52  ;;  %976 = vmatmul.mubr.f32.vlgmr.msra.gmra.mxu1 %v831_v52 }
 0x221   :  { %1035 = vmatpush1.msra.mxu1 %v3778_v50  ;;  %1070 = vmatprep.mubr.f32.mxu1 %v5287_v54 }
 0x222   :  { %1036 = vmatprep.subr.mxu1 %v3791_v43  ;;  %1185 = vmatpush1.msra.mxu0 %v3392_v6  ;;  %v5335_v6 = vld [vmem:[#allocation7_spill] sm:$0xff] }
 0x223   :  { %1037 = vmatpush1.msra.mxu1 %v3798_v57  ;;  %1186 = vmatprep.subr.mxu0 %v3404_v8  ;;  %v5337_v8 = vld [vmem:[#allocation8_spill] sm:$0xff] }
 0x224   :  { %3019 = vmatmul.mubr.msk.f32.vlgmr.msra.gmra.mxu1 %vm294_vm7, %v1003_v40  ;;  %1105 = vmatprep.subr.mxu1 %v3806_v58 }
 0x225   :  { %1106 = vmatpush1.msra.mxu1 %v3812_v55  ;;  %1141 = vmatprep.mubr.f32.mxu1 %v5287_v54 }
 0x226   :  { %1107 = vmatprep.subr.mxu1 %v3819_v47  ;;  %1187 = vmatpush1.msra.mxu0 %v3416_v10  ;;  %v5339_v10 = vld [vmem:[#allocation9_spill] sm:$0xff] }
 0x227   :  { %1108 = vmatpush1.msra.mxu1 %v3826_v3  ;;  %1188 = vmatprep.subr.mxu0 %v3421_v11  ;;  %v5340_v11 = vld [vmem:[#allocation20_spill] sm:$0xff] }
 0x228   :  { %3020 = vmatmul.mubr.msk.f32.vlgmr.msra.gmra.mxu1 %vm294_vm7, %v1003_v40  ;;  %1255 = vmatprep.subr.mxu1 %v3364_v0  ;;  %v5331_v0 = vld [vmem:[#allocation5_spill] sm:$0xff] }
 0x229   :  { %1256 = vmatpush1.msra.mxu1 %v3369_v1  ;;  %1189 = vmatpush1.msra.mxu0 %v3433_v13  ;;  %v5332_v1 = vld [vmem:[#allocation11_spill] sm:$0xff]  ;;  %v5342_v13 = vld [vmem:[#allocation22_spill] sm:$0xff] }
 0x22a   :  { %1257 = vmatprep.subr.mxu1 %v3374_v2  ;;  %1190 = vmatprep.subr.mxu0 %v3445_v15  ;;  %v5333_v2 = vld [vmem:[#allocation6_spill] sm:$0xff]  ;;  %v5344_v15 = vld [vmem:[#allocation24_spill] sm:$0xff] }
 0x22b   :  { %1258 = vmatpush1.msra.mxu1 %v3387_v5  ;;  %1191 = vmatpush1.msra.mxu0 %v3457_v17  ;;  %v5334_v5 = vld [vmem:[#allocation13_spill] sm:$0xff] }
 0x22c   :  { %1259 = vmatprep.subr.mxu1 %v3399_v7  ;;  %1192 = vmatprep.subr.mxu0 %v3469_v19  ;;  %v5336_v7 = vld [vmem:[#allocation16_spill] sm:$0xff]  ;;  %v5346_v17 = vld [vmem:[#allocation25_spill] sm:$0xff]  ;;  %v5348_v19 = vld [vmem:[#allocation27_spill] sm:$0xff] }
 0x22d   :  { %1260 = vmatpush1.msra.mxu1 %v3411_v9  ;;  %1193 = vmatpush1.msra.mxu0 %v3481_v21  ;;  %v5338_v9 = vld [vmem:[#allocation18_spill] sm:$0xff]  ;;  %v5350_v21 = vld [vmem:[#allocation29_spill] sm:$0xff] }
 0x22e   :  { %1261 = vmatprep.subr.mxu1 %v3428_v12  ;;  %1194 = vmatprep.subr.mxu0 %v3493_v23  ;;  %v5341_v12 = vld [vmem:[#allocation10_spill] sm:$0xff]  ;;  %v5352_v23 = vld [vmem:[#allocation31_spill] sm:$0xff] }
 0x22f   :  { %1262 = vmatpush1.msra.mxu1 %v3440_v14  ;;  %1195 = vmatpush1.msra.mxu0 %v3505_v25  ;;  %v5343_v14 = vld [vmem:[#allocation12_spill] sm:$0xff]  ;;  %v5354_v25 = vld [vmem:[#allocation33_spill] sm:$0xff] }
 0x230   :  { %1263 = vmatprep.subr.mxu1 %v3452_v16  ;;  %1196 = vmatprep.subr.mxu0 %v3517_v27  ;;  %v5345_v16 = vld [vmem:[#allocation14_spill] sm:$0xff]  ;;  %v5356_v27 = vld [vmem:[#allocation35_spill] sm:$0xff] }
 0x231   :  { %1264 = vmatpush1.msra.mxu1 %v3464_v18  ;;  %1197 = vmatpush1.msra.mxu0 %v3529_v29  ;;  %v5347_v18 = vld [vmem:[#allocation15_spill] sm:$0xff]  ;;  %v5357_v29 = vld [vmem:[#allocation26_spill] sm:$0xff] }
 0x232   :  { %1265 = vmatprep.subr.mxu1 %v3476_v20  ;;  %1198 = vmatprep.subr.mxu0 %v3541_v31  ;;  %v5349_v20 = vld [vmem:[#allocation17_spill] sm:$0xff] }
 0x233   :  { %1266 = vmatpush1.msra.mxu1 %v3488_v22  ;;  %1199 = vmatpush1.msra.mxu0 %v3553_v33  ;;  %v5351_v22 = vld [vmem:[#allocation19_spill] sm:$0xff]  ;;  %v5358_v31 = vld [vmem:[#allocation37_spill] sm:$0xff]  ;;  %v5359_v33 = vld [vmem:[#allocation28_spill] sm:$0xff] }
 0x234   :  { %1267 = vmatprep.subr.mxu1 %v3500_v24  ;;  %1200 = vmatprep.subr.mxu0 %v3565_v35  ;;  %v5353_v24 = vld [vmem:[#allocation21_spill] sm:$0xff]  ;;  %v5360_v35 = vld [vmem:[#allocation30_spill] sm:$0xff] }
 0x235   :  { %1268 = vmatpush1.msra.mxu1 %v3512_v26  ;;  %1201 = vmatpush1.msra.mxu0 %v3577_v37  ;;  %v5355_v26 = vld [vmem:[#allocation23_spill] sm:$0xff]  ;;  %v5361_v37 = vld [vmem:[#allocation32_spill] sm:$0xff] }
 0x236   :  { %1269 = vmatprep.subr.mxu1 %v5331_v0  ;;  %1202 = vmatprep.subr.mxu0 %v5332_v1 }
 0x237   :  { %1270 = vmatpush1.msra.mxu1 %v5333_v2  ;;  %1203 = vmatpush1.msra.mxu0 %v5334_v5 }
 0x238   :  { %1271 = vmatprep.subr.mxu1 %v5335_v6  ;;  %1204 = vmatprep.subr.mxu0 %v5336_v7 }
 0x239   :  { %1272 = vmatpush1.msra.mxu1 %v5337_v8  ;;  %1205 = vmatpush1.msra.mxu0 %v5338_v9  ;;  %v1177_v9 = vld [vmem:[%s5108_s0 + $0xb] sm:$0x1] }
 0x23a   :  { %1273 = vmatprep.subr.mxu1 %v5339_v10  ;;  %1206 = vmatprep.subr.mxu0 %v5340_v11 }
 0x23b   :  { %1274 = vmatpush1.msra.mxu1 %v5341_v12  ;;  %1207 = vmatpush1.msra.mxu0 %v5342_v13 }
 0x23c   :  { %1275 = vmatprep.subr.mxu1 %v5343_v14  ;;  %1208 = vmatprep.subr.mxu0 %v5344_v15  ;;  %v1178_v14 = vld [vmem:[%s5108_s0 + $0x13] sm:$0x1]  ;;  %v1334_v15 = vrot.slane %v1177_v9, 7  ;;  %v4362_v9 = vld [vmem:[%s5107_s4 + $0x100] sm:$0xff] }
 0x23d   :  { %1276 = vmatpush1.msra.mxu1 %v5345_v16  ;;  %1209 = vmatpush1.msra.mxu0 %v5346_v17 }
 0x23e   :  { %1277 = vmatprep.subr.mxu1 %v5347_v18  ;;  %1210 = vmatprep.subr.mxu0 %v5348_v19  ;;  %v1176_v18 = vld [vmem:[%s5108_s0 + $0x3] sm:$0x1] }
 0x23f   :  { %1278 = vmatpush1.msra.mxu1 %v5349_v20  ;;  %1211 = vmatpush1.msra.mxu0 %v5350_v21  ;;  %v1179_v20 = vld [vmem:[%s5108_s0 + $0x1b] sm:$0x1]  ;;  %v1336_v21 = vrot.slane %v1178_v14, 6 }
 0x240   :  { %1279 = vmatprep.subr.mxu1 %v5351_v22  ;;  %1212 = vmatprep.subr.mxu0 %v5352_v23  ;;  %v1335_v22 = vsel %vm274_vm0, %v1334_v15, %v1176_v18  ;;  %v1338_v23 = vrot.slane %v1179_v20, 5  ;;  %v4392_v14 = vld [vmem:[%s5107_s4 + $0x118] sm:$0xff]  ;;  %v4398_v15 = vld [vmem:[%s5107_s4 + $0xc8] sm:$0xff] }
 0x241   :  { %1280 = vmatpush1.msra.mxu1 %v5353_v24  ;;  %1213 = vmatpush1.msra.mxu0 %v5354_v25  ;;  %v1337_v24 = vsel %vm277_vm1, %v1336_v21, %v1335_v22  ;;  %v1181_v25 = vld [vmem:[%s5108_s0 + $0x2b] sm:$0x1]  ;;  %5366 = vst [vmem:[#allocation11_spill] sm:$0xff] %v4398_v15  ;;  %v4416_v18 = vld [vmem:[%s5107_s4 + $0xf8] sm:$0xff]  ;;  %v4428_v21 = vld [vmem:[%s5107_s4 + $0xf0] sm:$0xff] }
 0x242   :  { %1281 = vmatprep.subr.mxu1 %v5355_v26  ;;  %1214 = vmatprep.subr.mxu0 %v5356_v27  ;;  %v1339_v27 = vsel %vm280_vm2, %v1338_v23, %v1337_v24  ;;  %5368 = vst [vmem:[#allocation13_spill] sm:$0xff] %v4416_v18  ;;  %v4422_v20 = vld [vmem:[%s5107_s4 + $0xa8] sm:$0xff]  ;;  %5370 = vst [vmem:[#allocation16_spill] sm:$0xff] %v4428_v21  ;;  %v4434_v22 = vld [vmem:[%s5107_s4 + $0xa0] sm:$0xff] }
 0x243   :  { %1282 = vmatpush1.msra.mxu1 %v5357_v29  ;;  %1215 = vmatpush1.msra.mxu0 %v5358_v31  ;;  %v1182_v29 = vld [vmem:[%s5108_s0 + $0x33] sm:$0x1]  ;;  %v1342_v31 = vrot.slane %v1181_v25, 3  ;;  %5369 = vst [vmem:[#allocation7_spill] sm:$0xff] %v4422_v20  ;;  %5371 = vst [vmem:[#allocation8_spill] sm:$0xff] %v4434_v22  ;;  %v4446_v23 = vld [vmem:[%s5107_s4 + $0x88] sm:$0xff] }
 0x244   :  { %1283 = vmatprep.subr.mxu1 %v5359_v33  ;;  %1248 = vmatprep.mubr.f32.mxu0 %v5287_v54  ;;  %5373 = vst [vmem:[#allocation9_spill] sm:$0xff] %v4446_v23  ;;  %v4452_v24 = vld [vmem:[%s5107_s4 + $0xd0] sm:$0xff]  ;;  %v4458_v25 = vld [vmem:[%s5107_s4 + $0x80] sm:$0xff] }
 0x245   :  { %1284 = vmatpush1.msra.mxu1 %v5360_v35  ;;  %1319 = vmatprep.mubr.f32.mxu1 %v5287_v54  ;;  %v1183_v35 = vld [vmem:[%s5108_s0 + $0x3b] sm:$0x1]  ;;  %5374 = vst [vmem:[#allocation20_spill] sm:$0xff] %v4452_v24  ;;  %5375 = vst [vmem:[#allocation10_spill] sm:$0xff] %v4458_v25 }
 0x246   :  { %1285 = vmatprep.subr.mxu1 %v5361_v37  ;;  %1528 = vmatprep.subr.mxu0 %v4148_v56  ;;  %v1344_v37 = vrot.slane %v1182_v29, 2  ;;  %v4476_v29 = vld [vmem:[%s5107_s4 + $0xb0] sm:$0xff] }
 0x247   :  { %1286 = vmatpush1.msra.mxu1 %v5362_v45  ;;  %5378 = vst [vmem:[#allocation24_spill] sm:$0xff] %v4476_v29 }
 0x248   :  { %1378 = vmatprep.subr.mxu1 %v5363_v63 }
 0x2e0   :  { %v977_v4 = vpop.f32.mrf.mxu1  ;;  %v906_v61 = vpop.f32.mrf.mxu0 }
 0x2e2   :  { %v979_v53 = vpop.f32.mrf.mxu1  ;;  %v908_v46 = vpop.f32.mrf.mxu0 }
 0x2e4   :  { %v1072_v59 = vpop.f32.mrf.mxu1 }
 0x2e5   :  { %v1073_v34 = vadd.f32 %v1072_v59, %v906_v61  ;;  %v1346_v61 = vrot.slane %v1183_v35, 1  ;;  %v4494_v35 = vld [vmem:[%s5107_s4 + $0x48] sm:$0xff] }
 0x2e6   :  { %v1074_v38 = vpop.f32.mrf.mxu1  ;;  %5381 = vst [vmem:[#allocation15_spill] sm:$0xff] %v4494_v35 }
 0x2e7   :  { %v1148_v36 = vadd.f32 %v1073_v34, %v3904_v44  ;;  %v1075_v48 = vadd.f32 %v1074_v38, %v908_v46  ;;  %v4198_v46 = vld [vmem:[%s5107_s4 + $0x1e0] sm:$0xff]  ;;  %v4205_v38 = vld [vmem:[%s5107_s4 + $0x1c8] sm:$0xff] }
 0x2e8   :  { %v1143_v49 = vpop.f32.mrf.mxu1 }
 0x2e9   :  { %v3021_v42 = vmul.f32 -1.442695, %v1148_v36  ;;  %v1149_v60 = vadd.f32 %v1075_v48, %v3906_v32  ;;  %v1144_v40 = vadd.f32 %v1143_v49, %v977_v4  ;;  %v4260_v36 = vld [vmem:[%s5107_s4 + $0x1d0] sm:$0xff]  ;;  %v4266_v48 = vld [vmem:[%s5107_s4 + $0x180] sm:$0xff]  ;;  %v4272_v49 = vld [vmem:[%s5107_s4 + $0x1b8] sm:$0xff] }
 0x2ea   :  { %v1145_v62 = vpop.f32.mrf.mxu1 }
 0x2eb   :  { %3136 = vpow2.f32 %v3021_v42  ;;  %v3022_v39 = vmul.f32 -1.442695, %v1149_v60  ;;  %v1146_v52 = vadd.f32 %v1145_v62, %v979_v53  ;;  %v1150_v2 = vadd.f32 %v1144_v40, %v3913_v30  ;;  %v4278_v42 = vld [vmem:[%s5107_s4 + $0x168] sm:$0xff]  ;;  %v4284_v60 = vld [vmem:[%s5107_s4 + $0x1b0] sm:$0xff]  ;;  %v4296_v62 = vld [vmem:[%s5107_s4 + $0x198] sm:$0xff] }
 0x2ec   :  { %v4314_v40 = vld [vmem:[%s5107_s4 + $0x140] sm:$0xff] }
 0x2ed   :  { %3138 = vpow2.f32 %v3022_v39  ;;  %v1151_v28 = vadd.f32 %v1146_v52, %v3910_v41  ;;  %v4290_v39 = vld [vmem:[%s5107_s4 + $0x160] sm:$0xff]  ;;  %v4302_v52 = vld [vmem:[%s5107_s4 + $0x148] sm:$0xff] }
 0x2ef   :  { %v3023_v0 = vmul.f32 -1.442695, %v1151_v28  ;;  %v4308_v28 = vld [vmem:[%s5107_s4 + $0x190] sm:$0xff] }
 0x2f1   :  { %3140 = vpow2.f32 %v3023_v0  ;;  %v4320_v0 = vld [vmem:[%s5107_s4 + $0x178] sm:$0xff] }
 0x2f8   :  { %v3137_v1 = vpop.eup %3136 }
 0x2f9   :  { %v1155_v5 = vadd.f32 1.0, %v3137_v1  ;;  %v4326_v1 = vld [vmem:[%s5107_s4 + $0x128] sm:$0xff] }
 0x2fa   :  { %v3139_v6 = vpop.eup %3138 }
 0x2fb   :  { %3142 = vrcp.f32 %v1155_v5  ;;  %v1161_v7 = vadd.f32 1.0, %v3139_v6  ;;  %v4338_v5 = vld [vmem:[%s5107_s4 + $0x120] sm:$0xff]  ;;  %v4344_v6 = vld [vmem:[%s5107_s4 + $0x158] sm:$0xff] }
 0x2fc   :  { %3144 = vtanh.f32 %v1150_v2  ;;  %v4332_v2 = vld [vmem:[%s5107_s4 + $0x170] sm:$0xff] }
 0x2fd   :  { %3146 = vrcp.f32 %v1161_v7  ;;  %v4350_v7 = vld [vmem:[%s5107_s4 + $0x108] sm:$0xff] }
 0x2fe   :  { %v3141_v8 = vpop.eup %3140 }
 0x2ff   :  { %v1168_v13 = vadd.f32 1.0, %v3141_v8  ;;  %v4356_v8 = vld [vmem:[%s5107_s4 + $0x150] sm:$0xff] }
 0x301   :  { %3148 = vrcp.f32 %v1168_v13  ;;  %v4386_v13 = vld [vmem:[%s5107_s4 + $0xe0] sm:$0xff] }
 0x302   :  { %5365 = vst [vmem:[#allocation5_spill] sm:$0xff] %v4386_v13 }
 0x308   :  { %v3143_v10 = vpop.eup %3142 }
 0x309   :  { %v3145_v11 = vpop.eup %3144 }
 0x30a   :  { %v3147_v12 = vpop.eup %3146  ;;  %v1172_v17 = vmul.f32 %v3145_v11, %v3143_v10  ;;  %v4368_v10 = vld [vmem:[%s5107_s4 + $0x138] sm:$0xff]  ;;  %v4374_v11 = vld [vmem:[%s5107_s4 + $0xe8] sm:$0xff] }
 0x30b   :  { %v1171_v16 = vmul.f32 %v3147_v12, %v4045_v51  ;;  %v1180_v51 = vld [vmem:[%s5108_s0 + $0x23] sm:$0x1]  ;;  %5364 = vst [vmem:[#allocation4_spill] sm:$0xff] %v4374_v11  ;;  %v4380_v12 = vld [vmem:[%s5107_s4 + $0x130] sm:$0xff] }
 0x30c   :  { %v1340_v26 = vrot.slane %v1180_v51, 4  ;;  %v4440_v51 = vld [vmem:[%s5107_s4 + $0xd8] sm:$0xff] }
 0x30d   :  { %v4167_v19 = vadd.f32 %v1172_v17, %v1171_v16  ;;  %v4404_v16 = vld [vmem:[%s5107_s4 + $0x110] sm:$0xff]  ;;  %v4410_v17 = vld [vmem:[%s5107_s4 + $0xc0] sm:$0xff]  ;;  %5372 = vst [vmem:[#allocation18_spill] sm:$0xff] %v4440_v51 }
 0x30e   :  { %v1341_v33 = vsel %vm283_vm3, %v1340_v26, %v1339_v27  ;;  %v3149_v63 = vpop.eup %3148  ;;  %5367 = vst [vmem:[#allocation6_spill] sm:$0xff] %v4410_v17  ;;  %v4464_v26 = vld [vmem:[%s5107_s4 + $0xb8] sm:$0xff]  ;;  %v4470_v27 = vld [vmem:[%s5107_s4 + $0x68] sm:$0xff] }
 0x30f   :  { %3150 = vtanh.f32 %v4167_v19  ;;  %v1343_v45 = vsel %vm286_vm4, %v1342_v31, %v1341_v33  ;;  %5376 = vst [vmem:[#allocation22_spill] sm:$0xff] %v4464_v26  ;;  %5377 = vst [vmem:[#allocation12_spill] sm:$0xff] %v4470_v27  ;;  %v4482_v31 = vld [vmem:[%s5107_s4 + $0x60] sm:$0xff]  ;;  %v4488_v33 = vld [vmem:[%s5107_s4 + $0x98] sm:$0xff] }
 0x310   :  { %v1345_v59 = vsel %vm289_vm5, %v1344_v37, %v1343_v45  ;;  %5379 = vst [vmem:[#allocation14_spill] sm:$0xff] %v4482_v31  ;;  %5380 = vst [vmem:[#allocation25_spill] sm:$0xff] %v4488_v33  ;;  %v4500_v37 = vld [vmem:[%s5107_s4 + $0x90] sm:$0xff]  ;;  %v4506_v45 = vld [vmem:[%s5107_s4 + $0x40] sm:$0xff] }
 0x311   :  { %v1347_v34 = vsel %vm292_vm6, %v1346_v61, %v1345_v59  ;;  %5382 = vst [vmem:[#allocation27_spill] sm:$0xff] %v4500_v37  ;;  %5383 = vst [vmem:[#allocation17_spill] sm:$0xff] %v4506_v45  ;;  %v4524_v61 = vld [vmem:[%s5107_s4 + $0x70] sm:$0xff]  ;;  %v4536_v59 = vld [vmem:[%s5107_s4 + $0x58] sm:$0xff] }
 0x312   :  { %5386 = vst [vmem:[#allocation31_spill] sm:$0xff] %v4524_v61  ;;  %5388 = vst [vmem:[#allocation33_spill] sm:$0xff] %v4536_v59 }
 0x31c   :  { %v3151_v4 = vpop.eup %3150 }
 0x31d   :  { %v1175_v53 = vmul.f32 %v3151_v4, %v3149_v63  ;;  %v4512_v63 = vld [vmem:[%s5107_s4 + $0x78] sm:$0xff]  ;;  %v4518_v4 = vld [vmem:[%s5107_s4 + $0x28] sm:$0xff] }
 0x31e   :  { %5384 = vst [vmem:[#allocation29_spill] sm:$0xff] %v4512_v63  ;;  %5385 = vst [vmem:[#allocation19_spill] sm:$0xff] %v4518_v4 }
 0x31f   :  { %1249 = vmatmul.mubr.f32.vlgmr.msra.gmra.mxu0 %v1175_v53  ;;  %1320 = vmatmul.mubr.f32.vlgmr.msra.gmra.mxu1 %v1175_v53  ;;  %v4530_v53 = vld [vmem:[%s5107_s4 + $0x20] sm:$0xff] }
 0x320   :  { %1379 = vmatpush1.msra.mxu1 %v3778_v50  ;;  %1414 = vmatprep.mubr.f32.mxu1 %v5287_v54  ;;  %v4216_v50 = vld [vmem:[%s5107_s4 + $0x1c0] sm:$0xff]  ;;  %5387 = vst [vmem:[#allocation21_spill] sm:$0xff] %v4530_v53 }
 0x321   :  { %1380 = vmatprep.subr.mxu1 %v3791_v43  ;;  %1529 = vmatpush1.msra.mxu0 %v4198_v46  ;;  %v4223_v43 = vld [vmem:[%s5107_s4 + $0x1a8] sm:$0xff] }
 0x322   :  { %1381 = vmatpush1.msra.mxu1 %v3798_v57  ;;  %1530 = vmatprep.subr.mxu0 %v4205_v38  ;;  %v4230_v57 = vld [vmem:[%s5107_s4 + $0x1f8] sm:$0xff] }
 0x323   :  { %3024 = vmatmul.mubr.msk.f32.vlgmr.msra.gmra.mxu1 %vm294_vm7, %v1347_v34  ;;  %1449 = vmatprep.subr.mxu1 %v3806_v58  ;;  %v4236_v58 = vld [vmem:[%s5107_s4 + $0x1f0] sm:$0xff] }
 0x324   :  { %1450 = vmatpush1.msra.mxu1 %v3812_v55  ;;  %1485 = vmatprep.mubr.f32.mxu1 %v5287_v54  ;;  %v4242_v55 = vld [vmem:[%s5107_s4 + $0x1a0] sm:$0xff] }
 0x325   :  { %1451 = vmatprep.subr.mxu1 %v3819_v47  ;;  %1531 = vmatpush1.msra.mxu0 %v4216_v50  ;;  %v4248_v47 = vld [vmem:[%s5107_s4 + $0x1d8] sm:$0xff] }
 0x326   :  { %1452 = vmatpush1.msra.mxu1 %v3826_v3  ;;  %1532 = vmatprep.subr.mxu0 %v4223_v43  ;;  %v4254_v3 = vld [vmem:[%s5107_s4 + $0x188] sm:$0xff] }
 0x327   :  { %3025 = vmatmul.mubr.msk.f32.vlgmr.msra.gmra.mxu1 %vm294_vm7, %v1347_v34  ;;  %1599 = vmatprep.subr.mxu1 %v4230_v57  ;;  %v4542_v34 = vld [vmem:[%s5107_s4 + $0x8] sm:$0xff] }
 0x328   :  { %1600 = vmatpush1.msra.mxu1 %v4236_v58  ;;  %1533 = vmatpush1.msra.mxu0 %v4242_v55  ;;  %5389 = vst [vmem:[#allocation23_spill] sm:$0xff] %v4542_v34 }
 0x329   :  { %1601 = vmatprep.subr.mxu1 %v4248_v47  ;;  %1534 = vmatprep.subr.mxu0 %v4254_v3 }
 0x32a   :  { %1602 = vmatpush1.msra.mxu1 %v4260_v36  ;;  %1535 = vmatpush1.msra.mxu0 %v4266_v48 }
 0x32b   :  { %1603 = vmatprep.subr.mxu1 %v4272_v49  ;;  %1536 = vmatprep.subr.mxu0 %v4278_v42 }
 0x32c   :  { %1604 = vmatpush1.msra.mxu1 %v4284_v60  ;;  %1537 = vmatpush1.msra.mxu0 %v4290_v39 }
 0x32d   :  { %1605 = vmatprep.subr.mxu1 %v4296_v62  ;;  %1538 = vmatprep.subr.mxu0 %v4302_v52 }
 0x32e   :  { %1606 = vmatpush1.msra.mxu1 %v4308_v28  ;;  %1539 = vmatpush1.msra.mxu0 %v4314_v40 }
 0x32f   :  { %1607 = vmatprep.subr.mxu1 %v4320_v0  ;;  %1540 = vmatprep.subr.mxu0 %v4326_v1 }
 0x330   :  { %1608 = vmatpush1.msra.mxu1 %v4332_v2  ;;  %1541 = vmatpush1.msra.mxu0 %v4338_v5 }
 0x331   :  { %1609 = vmatprep.subr.mxu1 %v4344_v6  ;;  %1542 = vmatprep.subr.mxu0 %v4350_v7 }
 0x332   :  { %1610 = vmatpush1.msra.mxu1 %v4356_v8  ;;  %1543 = vmatpush1.msra.mxu0 %v4362_v9 }
 0x333   :  { %1611 = vmatprep.subr.mxu1 %v4368_v10  ;;  %1544 = vmatprep.subr.mxu0 %v4374_v11 }
 0x334   :  { %1612 = vmatpush1.msra.mxu1 %v4380_v12  ;;  %1545 = vmatpush1.msra.mxu0 %v4386_v13 }
 0x335   :  { %1613 = vmatprep.subr.mxu1 %v4392_v14  ;;  %1546 = vmatprep.subr.mxu0 %v4398_v15 }
 0x336   :  { %1614 = vmatpush1.msra.mxu1 %v4404_v16  ;;  %1547 = vmatpush1.msra.mxu0 %v4410_v17 }
 0x337   :  { %1615 = vmatprep.subr.mxu1 %v4416_v18  ;;  %1548 = vmatprep.subr.mxu0 %v4422_v20 }
 0x338   :  { %1616 = vmatpush1.msra.mxu1 %v4428_v21  ;;  %1549 = vmatpush1.msra.mxu0 %v4434_v22 }
 0x339   :  { %1617 = vmatprep.subr.mxu1 %v4440_v51  ;;  %1550 = vmatprep.subr.mxu0 %v4446_v23 }
 0x33a   :  { %1618 = vmatpush1.msra.mxu1 %v4452_v24  ;;  %1551 = vmatpush1.msra.mxu0 %v4458_v25 }
 0x33b   :  { %1619 = vmatprep.subr.mxu1 %v4464_v26  ;;  %1552 = vmatprep.subr.mxu0 %v4470_v27 }
 0x33c   :  { %1620 = vmatpush1.msra.mxu1 %v4476_v29  ;;  %1553 = vmatpush1.msra.mxu0 %v4482_v31 }
 0x33d   :  { %1621 = vmatprep.subr.mxu1 %v4488_v33  ;;  %1554 = vmatprep.subr.mxu0 %v4494_v35 }
 0x33e   :  { %1622 = vmatpush1.msra.mxu1 %v4500_v37  ;;  %1555 = vmatpush1.msra.mxu0 %v4506_v45  ;;  %v4560_v45 = vld [vmem:[%s5107_s4 + $0x38] sm:$0xff] }
 0x33f   :  { %1623 = vmatprep.subr.mxu1 %v4512_v63  ;;  %1556 = vmatprep.subr.mxu0 %v4518_v4  ;;  %v4548_v4 = vld [vmem:[%s5107_s4 + $0x50] sm:$0xff]  ;;  %5392 = vst [vmem:[#allocation37_spill] sm:$0xff] %v4560_v45 }
 0x340   :  { %1624 = vmatpush1.msra.mxu1 %v4524_v61  ;;  %1557 = vmatpush1.msra.mxu0 %v4530_v53  ;;  %5390 = vst [vmem:[#allocation35_spill] sm:$0xff] %v4548_v4  ;;  %v4554_v53 = vld [vmem:[%s5107_s4] sm:$0xff] }
 0x341   :  { %1625 = vmatprep.subr.mxu1 %v4536_v59  ;;  %1558 = vmatprep.subr.mxu0 %v4542_v34  ;;  %5391 = vst [vmem:[#allocation26_spill] sm:$0xff] %v4554_v53  ;;  %v4567_v34 = vld [vmem:[%s5107_s4 + $0x30] sm:$0xff] }
 0x342   :  { %1626 = vmatpush1.msra.mxu1 %v4548_v4  ;;  %1559 = vmatpush1.msra.mxu0 %v4554_v53  ;;  %5393 = vst [vmem:[#allocation28_spill] sm:$0xff] %v4567_v34  ;;  %v4574_v53 = vld [vmem:[%s5107_s4 + $0x18] sm:$0xff] }
 0x343   :  { %1627 = vmatprep.subr.mxu1 %v4560_v45  ;;  %1592 = vmatprep.mubr.f32.mxu0 %v5287_v54  ;;  %5394 = vst [vmem:[#allocation30_spill] sm:$0xff] %v4574_v53  ;;  %v4580_v45 = vld [vmem:[%s5110_s3 + $0x28] sm:$0xff]  ;;  %v4592_v4 = vld [vmem:[%s5110_s3 + $0x38] sm:$0xff] }
 0x344   :  { %1628 = vmatpush1.msra.mxu1 %v4567_v34  ;;  %1663 = vmatprep.mubr.f32.mxu1 %v5287_v54  ;;  %5395 = vst [vmem:[#allocation32_spill] sm:$0xff] %v4580_v45  ;;  %v4586_v34 = vld [vmem:[%s5107_s4 + $0x10] sm:$0xff]  ;;  %5397 = vst [vmem:[#allocation36_spill] sm:$0xff] %v4592_v4 }
 0x345   :  { %1629 = vmatprep.subr.mxu1 %v4574_v53  ;;  %1722 = vmatprep.subr.mxu0 %v4580_v45  ;;  %5396 = vst [vmem:[#allocation34_spill] sm:$0xff] %v4586_v34 }
 0x346   :  { %1630 = vmatpush1.msra.mxu1 %v4586_v34 }
 0x347   :  { %1793 = vmatprep.subr.mxu1 %v4592_v4 }
 0x3df   :  { %v1321_v53 = vpop.f32.mrf.mxu1  ;;  %v1250_v59 = vpop.f32.mrf.mxu0 }
 0x3e1   :  { %v1323_v35 = vpop.f32.mrf.mxu1  ;;  %v1252_v45 = vpop.f32.mrf.mxu0 }
 0x3e3   :  { %v1416_v61 = vpop.f32.mrf.mxu1 }
 0x3e4   :  { %v1417_v31 = vadd.f32 %v1416_v61, %v1250_v59 }
 0x3e5   :  { %v1418_v63 = vpop.f32.mrf.mxu1 }
 0x3e6   :  { %v1492_v27 = vadd.f32 %v1417_v31, %v3904_v44  ;;  %v1419_v37 = vadd.f32 %v1418_v63, %v1252_v45  ;;  %v1523_v45 = vld [vmem:[%s5108_s0 + $0x1c] sm:$0x1] }
 0x3e7   :  { %v1487_v25 = vpop.f32.mrf.mxu1 }
 0x3e8   :  { %v3026_v33 = vmul.f32 -1.442695, %v1492_v27  ;;  %v1493_v34 = vadd.f32 %v1419_v37, %v3906_v32  ;;  %v1488_v26 = vadd.f32 %v1487_v25, %v1321_v53  ;;  %v1682_v53 = vrot.slane %v1523_v45, 5  ;;  %v4636_v45 = vld [vmem:[%s5110_s3 + $0x20] sm:$0xff] }
 0x3e9   :  { %v1489_v29 = vpop.f32.mrf.mxu1 }
 0x3ea   :  { %3152 = vpow2.f32 %v3026_v33  ;;  %v3027_v23 = vmul.f32 -1.442695, %v1493_v34  ;;  %v1490_v22 = vadd.f32 %v1489_v29, %v1323_v35  ;;  %v1494_v61 = vadd.f32 %v1488_v26, %v3913_v30 }
 0x3ec   :  { %3154 = vpow2.f32 %v3027_v23  ;;  %v1495_v4 = vadd.f32 %v1490_v22, %v3910_v41  ;;  %v1521_v23 = vld [vmem:[%s5108_s0 + $0xc] sm:$0x1] }
 0x3ee   :  { %v3028_v20 = vmul.f32 -1.442695, %v1495_v4  ;;  %v1524_v4 = vld [vmem:[%s5108_s0 + $0x24] sm:$0x1] }
 0x3f0   :  { %3156 = vpow2.f32 %v3028_v20  ;;  %v1522_v20 = vld [vmem:[%s5108_s0 + $0x14] sm:$0x1] }
 0x3f1   :  { %v1680_v63 = vrot.slane %v1522_v20, 6 }
 0x3f7   :  { %v3153_v24 = vpop.eup %3152 }
 0x3f8   :  { %v1499_v59 = vadd.f32 1.0, %v3153_v24  ;;  %v1678_v24 = vrot.slane %v1521_v23, 7 }
 0x3f9   :  { %v3155_v17 = vpop.eup %3154 }
 0x3fa   :  { %3158 = vrcp.f32 %v1499_v59  ;;  %v1505_v31 = vadd.f32 1.0, %v3155_v17  ;;  %v1520_v17 = vld [vmem:[%s5108_s0 + $0x4] sm:$0x1]  ;;  %v1684_v59 = vrot.slane %v1524_v4, 4  ;;  %v4654_v4 = vld [vmem:[%s5110_s3 + $0x18] sm:$0xff] }
 0x3fb   :  { %3160 = vtanh.f32 %v1494_v61  ;;  %v1525_v61 = vld [vmem:[%s5108_s0 + $0x2c] sm:$0x1] }
 0x3fc   :  { %3162 = vrcp.f32 %v1505_v31 }
 0x3fd   :  { %v3157_v27 = vpop.eup %3156 }
 0x3fe   :  { %v1512_v25 = vadd.f32 1.0, %v3157_v27  ;;  %v1526_v27 = vld [vmem:[%s5108_s0 + $0x34] sm:$0x1] }
 0x400   :  { %3164 = vrcp.f32 %v1512_v25 }
 0x407   :  { %v3159_v33 = vpop.eup %3158 }
 0x408   :  { %v3161_v29 = vpop.eup %3160 }
 0x409   :  { %v3163_v22 = vpop.eup %3162  ;;  %v1516_v37 = vmul.f32 %v3161_v29, %v3159_v33  ;;  %v1686_v33 = vrot.slane %v1525_v61, 3  ;;  %v1527_v29 = vld [vmem:[%s5108_s0 + $0x3c] sm:$0x1]  ;;  %v4668_v61 = vld [vmem:[%s5110_s3 + $0x10] sm:$0xff] }
 0x40a   :  { %v1515_v35 = vmul.f32 %v3163_v22, %v4167_v19  ;;  %v1679_v19 = vsel %vm274_vm0, %v1678_v24, %v1520_v17  ;;  %v1688_v22 = vrot.slane %v1526_v27, 2  ;;  %v1690_v24 = vrot.slane %v1527_v29, 1  ;;  %v5400_v27 = vld [vmem:[#allocation7_spill] sm:$0xff]  ;;  %v5403_v29 = vld [vmem:[#allocation24_spill] sm:$0xff] }
 0x40b   :  { %v1681_v34 = vsel %vm277_vm1, %v1680_v63, %v1679_v19  ;;  %v4642_v63 = vld [vmem:[%s5110_s3 + $0x30] sm:$0xff]  ;;  %v4648_v19 = vld [vmem:[%s5110_s3 + $0x8] sm:$0xff] }
 0x40c   :  { %v4609_v26 = vadd.f32 %v1516_v37, %v1515_v35  ;;  %v1683_v31 = vsel %vm280_vm2, %v1682_v53, %v1681_v34  ;;  %v4661_v34 = vld [vmem:[%s5110_s3] sm:$0xff] }
 0x40d   :  { %v1685_v23 = vsel %vm283_vm3, %v1684_v59, %v1683_v31  ;;  %v3165_v25 = vpop.eup %3164  ;;  %v5398_v59 = vld [vmem:[#allocation6_spill] sm:$0xff]  ;;  %v5399_v31 = vld [vmem:[#allocation20_spill] sm:$0xff] }
 0x40e   :  { %3166 = vtanh.f32 %v4609_v26  ;;  %v1687_v35 = vsel %vm286_vm4, %v1686_v33, %v1685_v23  ;;  %v5401_v33 = vld [vmem:[#allocation22_spill] sm:$0xff]  ;;  %v5402_v23 = vld [vmem:[#allocation8_spill] sm:$0xff] }
 0x40f   :  { %v1689_v17 = vsel %vm289_vm5, %v1688_v22, %v1687_v35  ;;  %v5404_v22 = vld [vmem:[#allocation9_spill] sm:$0xff]  ;;  %v5406_v35 = vld [vmem:[#allocation10_spill] sm:$0xff] }
 0x410   :  { %v1691_v53 = vsel %vm292_vm6, %v1690_v24, %v1689_v17  ;;  %v5409_v24 = vld [vmem:[#allocation29_spill] sm:$0xff]  ;;  %v5410_v17 = vld [vmem:[#allocation14_spill] sm:$0xff] }
 0x41b   :  { %v3167_v37 = vpop.eup %3166 }
 0x41c   :  { %v1519_v20 = vmul.f32 %v3167_v37, %v3165_v25  ;;  %v5405_v25 = vld [vmem:[#allocation25_spill] sm:$0xff]  ;;  %v5407_v37 = vld [vmem:[#allocation27_spill] sm:$0xff] }
 0x41e   :  { %1593 = vmatmul.mubr.f32.vlgmr.msra.gmra.mxu0 %v1519_v20  ;;  %1664 = vmatmul.mubr.f32.vlgmr.msra.gmra.mxu1 %v1519_v20  ;;  %v5408_v20 = vld [vmem:[#allocation12_spill] sm:$0xff] }
 0x41f   :  { %1723 = vmatpush1.msra.mxu0 %v4636_v45  ;;  %1794 = vmatpush1.msra.mxu1 %v4642_v63 }
 0x420   :  { %1724 = vmatprep.subr.mxu0 %v4648_v19  ;;  %1795 = vmatprep.subr.mxu1 %v4654_v4 }
 0x421   :  { %1725 = vmatpush1.msra.mxu0 %v4661_v34  ;;  %1758 = vmatprep.mubr.f32.mxu0 %v5287_v54 }
 0x422   :  { %1796 = vmatpush1.msra.mxu1 %v4668_v61  ;;  %1829 = vmatprep.mubr.f32.mxu1 %v5287_v54 }
 0x423   :  { %3029 = vmatmul.mubr.msk.f32.vlgmr.msra.gmra.mxu0 %vm294_vm7, %v1691_v53  ;;  %3030 = vmatmul.mubr.msk.f32.vlgmr.msra.gmra.mxu1 %vm294_vm7, %v1691_v53  ;;  %v5411_v53 = vld [vmem:[#allocation31_spill] sm:$0xff] }
 0x424   :  { %1872 = vmatprep.subr.mxu0 %v4148_v56  ;;  %1943 = vmatprep.subr.mxu1 %v4230_v57 }
 0x425   :  { %1873 = vmatpush1.msra.mxu0 %v4198_v46  ;;  %1944 = vmatpush1.msra.mxu1 %v4236_v58 }
 0x426   :  { %1874 = vmatprep.subr.mxu0 %v4205_v38  ;;  %1945 = vmatprep.subr.mxu1 %v4248_v47 }
 0x427   :  { %1875 = vmatpush1.msra.mxu0 %v4216_v50  ;;  %1946 = vmatpush1.msra.mxu1 %v4260_v36 }
 0x428   :  { %1876 = vmatprep.subr.mxu0 %v4223_v43  ;;  %1947 = vmatprep.subr.mxu1 %v4272_v49 }
 0x429   :  { %1877 = vmatpush1.msra.mxu0 %v4242_v55  ;;  %1948 = vmatpush1.msra.mxu1 %v4284_v60 }
 0x42a   :  { %1878 = vmatprep.subr.mxu0 %v4254_v3  ;;  %1949 = vmatprep.subr.mxu1 %v4296_v62 }
 0x42b   :  { %1879 = vmatpush1.msra.mxu0 %v4266_v48  ;;  %1950 = vmatpush1.msra.mxu1 %v4308_v28 }
 0x42c   :  { %1880 = vmatprep.subr.mxu0 %v4278_v42  ;;  %1951 = vmatprep.subr.mxu1 %v4320_v0 }
 0x42d   :  { %1881 = vmatpush1.msra.mxu0 %v4290_v39  ;;  %1952 = vmatpush1.msra.mxu1 %v4332_v2 }
 0x42e   :  { %1882 = vmatprep.subr.mxu0 %v4302_v52  ;;  %1953 = vmatprep.subr.mxu1 %v4344_v6 }
 0x42f   :  { %1883 = vmatpush1.msra.mxu0 %v4314_v40  ;;  %1954 = vmatpush1.msra.mxu1 %v4356_v8 }
 0x430   :  { %1884 = vmatprep.subr.mxu0 %v4326_v1  ;;  %1955 = vmatprep.subr.mxu1 %v4368_v10 }
 0x431   :  { %1885 = vmatpush1.msra.mxu0 %v4338_v5  ;;  %1956 = vmatpush1.msra.mxu1 %v4380_v12 }
 0x432   :  { %1886 = vmatprep.subr.mxu0 %v4350_v7  ;;  %1957 = vmatprep.subr.mxu1 %v4392_v14 }
 0x433   :  { %1887 = vmatpush1.msra.mxu0 %v4362_v9  ;;  %1958 = vmatpush1.msra.mxu1 %v4404_v16 }
 0x434   :  { %1888 = vmatprep.subr.mxu0 %v4374_v11  ;;  %1959 = vmatprep.subr.mxu1 %v4416_v18 }
 0x435   :  { %1889 = vmatpush1.msra.mxu0 %v4386_v13  ;;  %1960 = vmatpush1.msra.mxu1 %v4428_v21 }
 0x436   :  { %1890 = vmatprep.subr.mxu0 %v4398_v15  ;;  %1961 = vmatprep.subr.mxu1 %v4440_v51 }
 0x437   :  { %1891 = vmatpush1.msra.mxu0 %v5398_v59  ;;  %1962 = vmatpush1.msra.mxu1 %v5399_v31 }
 0x438   :  { %1892 = vmatprep.subr.mxu0 %v5400_v27  ;;  %1963 = vmatprep.subr.mxu1 %v5401_v33  ;;  %v5412_v33 = vld [vmem:[#allocation15_spill] sm:$0xff] }
 0x439   :  { %1893 = vmatpush1.msra.mxu0 %v5402_v23  ;;  %1964 = vmatpush1.msra.mxu1 %v5403_v29  ;;  %v5413_v23 = vld [vmem:[#allocation33_spill] sm:$0xff] }
 0x43a   :  { %1894 = vmatprep.subr.mxu0 %v5404_v22  ;;  %1965 = vmatprep.subr.mxu1 %v5405_v25  ;;  %v5414_v29 = vld [vmem:[#allocation17_spill] sm:$0xff]  ;;  %v5415_v22 = vld [vmem:[#allocation35_spill] sm:$0xff] }
 0x43b   :  { %1895 = vmatpush1.msra.mxu0 %v5406_v35  ;;  %1966 = vmatpush1.msra.mxu1 %v5407_v37  ;;  %v5416_v25 = vld [vmem:[#allocation19_spill] sm:$0xff]  ;;  %v5417_v35 = vld [vmem:[#allocation37_spill] sm:$0xff] }
 0x43c   :  { %1896 = vmatprep.subr.mxu0 %v5408_v20  ;;  %1967 = vmatprep.subr.mxu1 %v5409_v24  ;;  %v5418_v37 = vld [vmem:[#allocation21_spill] sm:$0xff]  ;;  %v5419_v20 = vld [vmem:[#allocation28_spill] sm:$0xff]  ;;  %v5420_v24 = vld [vmem:[#allocation23_spill] sm:$0xff] }
 0x43d   :  { %1897 = vmatpush1.msra.mxu0 %v5410_v17  ;;  %1968 = vmatpush1.msra.mxu1 %v5411_v53  ;;  %v5421_v17 = vld [vmem:[#allocation30_spill] sm:$0xff] }
 0x43e   :  { %1898 = vmatprep.subr.mxu0 %v5412_v33  ;;  %1969 = vmatprep.subr.mxu1 %v5413_v23  ;;  %v5422_v53 = vld [vmem:[#allocation26_spill] sm:$0xff] }
 0x43f   :  { %1899 = vmatpush1.msra.mxu0 %v5414_v29  ;;  %1970 = vmatpush1.msra.mxu1 %v5415_v22  ;;  %v5423_v23 = vld [vmem:[#allocation34_spill] sm:$0xff]  ;;  %v5424_v22 = vld [vmem:[#allocation32_spill] sm:$0xff] }
 0x440   :  { %1900 = vmatprep.subr.mxu0 %v5416_v25  ;;  %1971 = vmatprep.subr.mxu1 %v5417_v35  ;;  %v5425_v25 = vld [vmem:[#allocation36_spill] sm:$0xff] }
 0x441   :  { %1901 = vmatpush1.msra.mxu0 %v5418_v37  ;;  %1972 = vmatpush1.msra.mxu1 %v5419_v20 }
 0x442   :  { %1902 = vmatprep.subr.mxu0 %v5420_v24  ;;  %1973 = vmatprep.subr.mxu1 %v5421_v17 }
 0x443   :  { %1903 = vmatpush1.msra.mxu0 %v5422_v53  ;;  %1936 = vmatprep.mubr.f32.mxu0 %v5287_v54 }
 0x444   :  { %1974 = vmatpush1.msra.mxu1 %v5423_v23  ;;  %2007 = vmatprep.mubr.f32.mxu1 %v5287_v54 }
 0x445   :  { %2066 = vmatprep.subr.mxu0 %v5424_v22  ;;  %2137 = vmatprep.subr.mxu1 %v5425_v25 }
 0x4de   :  { %v1594_v35 = vpop.f32.mrf.mxu0  ;;  %v1665_v37 = vpop.f32.mrf.mxu1 }
 0x4e0   :  { %v1596_v29 = vpop.f32.mrf.mxu0  ;;  %v1667_v20 = vpop.f32.mrf.mxu1 }
 0x4e3   :  { %v1760_v33 = vpop.f32.mrf.mxu0  ;;  %v1831_v53 = vpop.f32.mrf.mxu1 }
 0x4e4   :  { %v1761_v24 = vadd.f32 %v1760_v33, %v1594_v35  ;;  %v1832_v21 = vadd.f32 %v1831_v53, %v1665_v37  ;;  %v1867_v37 = vld [vmem:[%s5108_s0 + $0x1d] sm:$0x1] }
 0x4e5   :  { %v1762_v27 = vpop.f32.mrf.mxu0  ;;  %v1833_v15 = vpop.f32.mrf.mxu1 }
 0x4e6   :  { %v1836_v17 = vadd.f32 %v1761_v24, %v3904_v44  ;;  %v1763_v31 = vadd.f32 %v1762_v27, %v1596_v29  ;;  %v1834_v22 = vadd.f32 %v1833_v15, %v1667_v20  ;;  %v1838_v33 = vadd.f32 %v1832_v21, %v3913_v30  ;;  %v1865_v15 = vld [vmem:[%s5108_s0 + $0xd] sm:$0x1]  ;;  %v1868_v24 = vld [vmem:[%s5108_s0 + $0x25] sm:$0x1] }
 0x4e8   :  { %v3031_v59 = vmul.f32 -1.442695, %v1836_v17  ;;  %v1837_v23 = vadd.f32 %v1763_v31, %v3906_v32  ;;  %v1839_v25 = vadd.f32 %v1834_v22, %v3910_v41  ;;  %v2026_v17 = vrot.slane %v1867_v37, 5 }
 0x4ea   :  { %3168 = vpow2.f32 %v3031_v59  ;;  %v3032_v51 = vmul.f32 -1.442695, %v1837_v23  ;;  %v3033_v13 = vmul.f32 -1.442695, %v1839_v25 }
 0x4ec   :  { %3170 = vpow2.f32 %v3032_v51 }
 0x4ed   :  { %3172 = vpow2.f32 %v3033_v13  ;;  %v1866_v13 = vld [vmem:[%s5108_s0 + $0x15] sm:$0x1] }
 0x4ee   :  { %v2024_v20 = vrot.slane %v1866_v13, 6 }
 0x4f7   :  { %v3169_v18 = vpop.eup %3168 }
 0x4f8   :  { %v1843_v35 = vadd.f32 1.0, %v3169_v18  ;;  %v2022_v18 = vrot.slane %v1865_v15, 7 }
 0x4f9   :  { %v3171_v11 = vpop.eup %3170 }
 0x4fa   :  { %3174 = vrcp.f32 %v1843_v35  ;;  %v1849_v27 = vadd.f32 1.0, %v3171_v11  ;;  %v3173_v31 = vpop.eup %3172  ;;  %v1864_v11 = vld [vmem:[%s5108_s0 + $0x5] sm:$0x1]  ;;  %v2028_v35 = vrot.slane %v1868_v24, 4  ;;  %v5428_v24 = vld [vmem:[#allocation5_spill] sm:$0xff] }
 0x4fb   :  { %3176 = vtanh.f32 %v1838_v33  ;;  %v1856_v29 = vadd.f32 1.0, %v3173_v31  ;;  %v1869_v33 = vld [vmem:[%s5108_s0 + $0x2d] sm:$0x1]  ;;  %v1870_v31 = vld [vmem:[%s5108_s0 + $0x35] sm:$0x1] }
 0x4fc   :  { %3178 = vrcp.f32 %v1849_v27 }
 0x4fd   :  { %3180 = vrcp.f32 %v1856_v29 }
 0x507   :  { %v3175_v59 = vpop.eup %3174 }
 0x508   :  { %v3177_v51 = vpop.eup %3176 }
 0x509   :  { %v3179_v23 = vpop.eup %3178  ;;  %v1860_v22 = vmul.f32 %v3177_v51, %v3175_v59  ;;  %v2030_v59 = vrot.slane %v1869_v33, 3  ;;  %v1871_v51 = vld [vmem:[%s5108_s0 + $0x3d] sm:$0x1]  ;;  %v5431_v33 = vld [vmem:[#allocation18_spill] sm:$0xff] }
 0x50a   :  { %v1859_v25 = vmul.f32 %v3179_v23, %v4609_v26  ;;  %v2023_v26 = vsel %vm274_vm0, %v2022_v18, %v1864_v11  ;;  %v2032_v23 = vrot.slane %v1870_v31, 2  ;;  %v3181_v29 = vpop.eup %3180  ;;  %v2034_v18 = vrot.slane %v1871_v51, 1  ;;  %v5434_v31 = vld [vmem:[#allocation7_spill] sm:$0xff]  ;;  %v5437_v51 = vld [vmem:[#allocation24_spill] sm:$0xff] }
 0x50b   :  { %v2025_v53 = vsel %vm277_vm1, %v2024_v20, %v2023_v26  ;;  %v5426_v20 = vld [vmem:[#allocation4_spill] sm:$0xff]  ;;  %v5427_v26 = vld [vmem:[#allocation13_spill] sm:$0xff] }
 0x50c   :  { %v4756_v21 = vadd.f32 %v1860_v22, %v1859_v25  ;;  %v2027_v27 = vsel %vm280_vm2, %v2026_v17, %v2025_v53  ;;  %v5429_v17 = vld [vmem:[#allocation16_spill] sm:$0xff]  ;;  %v5430_v53 = vld [vmem:[#allocation11_spill] sm:$0xff] }
 0x50d   :  { %v2029_v15 = vsel %vm283_vm3, %v2028_v35, %v2027_v27  ;;  %v5432_v35 = vld [vmem:[#allocation6_spill] sm:$0xff]  ;;  %v5433_v27 = vld [vmem:[#allocation20_spill] sm:$0xff] }
 0x50e   :  { %3182 = vtanh.f32 %v4756_v21  ;;  %v2031_v22 = vsel %vm286_vm4, %v2030_v59, %v2029_v15  ;;  %v5435_v59 = vld [vmem:[#allocation22_spill] sm:$0xff]  ;;  %v5436_v15 = vld [vmem:[#allocation8_spill] sm:$0xff] }
 0x50f   :  { %v2033_v11 = vsel %vm289_vm5, %v2032_v23, %v2031_v22  ;;  %v5438_v23 = vld [vmem:[#allocation9_spill] sm:$0xff]  ;;  %v5440_v22 = vld [vmem:[#allocation10_spill] sm:$0xff] }
 0x510   :  { %v2035_v37 = vsel %vm292_vm6, %v2034_v18, %v2033_v11  ;;  %v5443_v18 = vld [vmem:[#allocation29_spill] sm:$0xff]  ;;  %v5444_v11 = vld [vmem:[#allocation14_spill] sm:$0xff] }
 0x51b   :  { %v3183_v25 = vpop.eup %3182 }
 0x51c   :  { %v1863_v13 = vmul.f32 %v3183_v25, %v3181_v29  ;;  %v5439_v29 = vld [vmem:[#allocation25_spill] sm:$0xff]  ;;  %v5441_v25 = vld [vmem:[#allocation27_spill] sm:$0xff] }
 0x51e   :  { %1937 = vmatmul.mubr.f32.vlgmr.msra.gmra.mxu0 %v1863_v13  ;;  %2008 = vmatmul.mubr.f32.vlgmr.msra.gmra.mxu1 %v1863_v13  ;;  %v5442_v13 = vld [vmem:[#allocation12_spill] sm:$0xff] }
 0x51f   :  { %2067 = vmatpush1.msra.mxu0 %v4636_v45  ;;  %2138 = vmatpush1.msra.mxu1 %v4642_v63 }
 0x520   :  { %2068 = vmatprep.subr.mxu0 %v4648_v19  ;;  %2139 = vmatprep.subr.mxu1 %v4654_v4 }
 0x521   :  { %2069 = vmatpush1.msra.mxu0 %v4661_v34  ;;  %2102 = vmatprep.mubr.f32.mxu0 %v5287_v54 }
 0x522   :  { %2140 = vmatpush1.msra.mxu1 %v4668_v61  ;;  %2173 = vmatprep.mubr.f32.mxu1 %v5287_v54 }
 0x523   :  { %3034 = vmatmul.mubr.msk.f32.vlgmr.msra.gmra.mxu0 %vm294_vm7, %v2035_v37  ;;  %3035 = vmatmul.mubr.msk.f32.vlgmr.msra.gmra.mxu1 %vm294_vm7, %v2035_v37  ;;  %v5445_v37 = vld [vmem:[#allocation31_spill] sm:$0xff] }
 0x524   :  { %2216 = vmatprep.subr.mxu0 %v4148_v56  ;;  %2287 = vmatprep.subr.mxu1 %v4230_v57 }
 0x525   :  { %2217 = vmatpush1.msra.mxu0 %v4198_v46  ;;  %2288 = vmatpush1.msra.mxu1 %v4236_v58 }
 0x526   :  { %2218 = vmatprep.subr.mxu0 %v4205_v38  ;;  %2289 = vmatprep.subr.mxu1 %v4248_v47 }
 0x527   :  { %2219 = vmatpush1.msra.mxu0 %v4216_v50  ;;  %2290 = vmatpush1.msra.mxu1 %v4260_v36 }
 0x528   :  { %2220 = vmatprep.subr.mxu0 %v4223_v43  ;;  %2291 = vmatprep.subr.mxu1 %v4272_v49 }
 0x529   :  { %2221 = vmatpush1.msra.mxu0 %v4242_v55  ;;  %2292 = vmatpush1.msra.mxu1 %v4284_v60 }
 0x52a   :  { %2222 = vmatprep.subr.mxu0 %v4254_v3  ;;  %2293 = vmatprep.subr.mxu1 %v4296_v62 }
 0x52b   :  { %2223 = vmatpush1.msra.mxu0 %v4266_v48  ;;  %2294 = vmatpush1.msra.mxu1 %v4308_v28 }
 0x52c   :  { %2224 = vmatprep.subr.mxu0 %v4278_v42  ;;  %2295 = vmatprep.subr.mxu1 %v4320_v0 }
 0x52d   :  { %2225 = vmatpush1.msra.mxu0 %v4290_v39  ;;  %2296 = vmatpush1.msra.mxu1 %v4332_v2 }
 0x52e   :  { %2226 = vmatprep.subr.mxu0 %v4302_v52  ;;  %2297 = vmatprep.subr.mxu1 %v4344_v6 }
 0x52f   :  { %2227 = vmatpush1.msra.mxu0 %v4314_v40  ;;  %2298 = vmatpush1.msra.mxu1 %v4356_v8 }
 0x530   :  { %2228 = vmatprep.subr.mxu0 %v4326_v1  ;;  %2299 = vmatprep.subr.mxu1 %v4368_v10 }
 0x531   :  { %2229 = vmatpush1.msra.mxu0 %v4338_v5  ;;  %2300 = vmatpush1.msra.mxu1 %v4380_v12 }
 0x532   :  { %2230 = vmatprep.subr.mxu0 %v4350_v7  ;;  %2301 = vmatprep.subr.mxu1 %v4392_v14 }
 0x533   :  { %2231 = vmatpush1.msra.mxu0 %v4362_v9  ;;  %2302 = vmatpush1.msra.mxu1 %v4404_v16 }
 0x534   :  { %2232 = vmatprep.subr.mxu0 %v5426_v20  ;;  %2303 = vmatprep.subr.mxu1 %v5427_v26 }
 0x535   :  { %2233 = vmatpush1.msra.mxu0 %v5428_v24  ;;  %2304 = vmatpush1.msra.mxu1 %v5429_v17 }
 0x536   :  { %2234 = vmatprep.subr.mxu0 %v5430_v53  ;;  %2305 = vmatprep.subr.mxu1 %v5431_v33 }
 0x537   :  { %2235 = vmatpush1.msra.mxu0 %v5432_v35  ;;  %2306 = vmatpush1.msra.mxu1 %v5433_v27 }
 0x538   :  { %2236 = vmatprep.subr.mxu0 %v5434_v31  ;;  %2307 = vmatprep.subr.mxu1 %v5435_v59  ;;  %v5446_v59 = vld [vmem:[#allocation15_spill] sm:$0xff] }
 0x539   :  { %2237 = vmatpush1.msra.mxu0 %v5436_v15  ;;  %2308 = vmatpush1.msra.mxu1 %v5437_v51  ;;  %v5447_v15 = vld [vmem:[#allocation33_spill] sm:$0xff] }
 0x53a   :  { %2238 = vmatprep.subr.mxu0 %v5438_v23  ;;  %2309 = vmatprep.subr.mxu1 %v5439_v29  ;;  %v5448_v51 = vld [vmem:[#allocation17_spill] sm:$0xff]  ;;  %v5449_v23 = vld [vmem:[#allocation35_spill] sm:$0xff] }
 0x53b   :  { %2239 = vmatpush1.msra.mxu0 %v5440_v22  ;;  %2310 = vmatpush1.msra.mxu1 %v5441_v25  ;;  %v5450_v29 = vld [vmem:[#allocation19_spill] sm:$0xff]  ;;  %v5451_v22 = vld [vmem:[#allocation37_spill] sm:$0xff] }
 0x53c   :  { %2240 = vmatprep.subr.mxu0 %v5442_v13  ;;  %2311 = vmatprep.subr.mxu1 %v5443_v18  ;;  %v5452_v25 = vld [vmem:[#allocation21_spill] sm:$0xff]  ;;  %v5453_v13 = vld [vmem:[#allocation28_spill] sm:$0xff]  ;;  %v5454_v18 = vld [vmem:[#allocation23_spill] sm:$0xff] }
 0x53d   :  { %2241 = vmatpush1.msra.mxu0 %v5444_v11  ;;  %2312 = vmatpush1.msra.mxu1 %v5445_v37  ;;  %v5455_v11 = vld [vmem:[#allocation30_spill] sm:$0xff] }
 0x53e   :  { %2242 = vmatprep.subr.mxu0 %v5446_v59  ;;  %2313 = vmatprep.subr.mxu1 %v5447_v15  ;;  %v5456_v37 = vld [vmem:[#allocation26_spill] sm:$0xff] }
 0x53f   :  { %2243 = vmatpush1.msra.mxu0 %v5448_v51  ;;  %2314 = vmatpush1.msra.mxu1 %v5449_v23  ;;  %v5457_v15 = vld [vmem:[#allocation34_spill] sm:$0xff]  ;;  %v5458_v23 = vld [vmem:[#allocation32_spill] sm:$0xff] }
 0x540   :  { %2244 = vmatprep.subr.mxu0 %v5450_v29  ;;  %2315 = vmatprep.subr.mxu1 %v5451_v22  ;;  %v5459_v29 = vld [vmem:[#allocation36_spill] sm:$0xff] }
 0x541   :  { %2245 = vmatpush1.msra.mxu0 %v5452_v25  ;;  %2316 = vmatpush1.msra.mxu1 %v5453_v13 }
 0x542   :  { %2246 = vmatprep.subr.mxu0 %v5454_v18  ;;  %2317 = vmatprep.subr.mxu1 %v5455_v11 }
 0x543   :  { %2247 = vmatpush1.msra.mxu0 %v5456_v37  ;;  %2280 = vmatprep.mubr.f32.mxu0 %v5287_v54 }
 0x544   :  { %2318 = vmatpush1.msra.mxu1 %v5457_v15  ;;  %2351 = vmatprep.mubr.f32.mxu1 %v5287_v54 }
 0x545   :  { %2410 = vmatprep.subr.mxu0 %v5458_v23  ;;  %2481 = vmatprep.subr.mxu1 %v5459_v29 }
 0x5de   :  { %v1938_v22 = vpop.f32.mrf.mxu0  ;;  %v2009_v25 = vpop.f32.mrf.mxu1 }
 0x5e0   :  { %v1940_v51 = vpop.f32.mrf.mxu0  ;;  %v2011_v13 = vpop.f32.mrf.mxu1 }
 0x5e3   :  { %v2104_v59 = vpop.f32.mrf.mxu0  ;;  %v2175_v37 = vpop.f32.mrf.mxu1 }
 0x5e4   :  { %v2105_v18 = vadd.f32 %v2104_v59, %v1938_v22  ;;  %v2176_v17 = vadd.f32 %v2175_v37, %v2009_v25  ;;  %v2211_v25 = vld [vmem:[%s5108_s0 + $0x1e] sm:$0x1] }
 0x5e5   :  { %v2106_v31 = vpop.f32.mrf.mxu0  ;;  %v2177_v53 = vpop.f32.mrf.mxu1 }
 0x5e6   :  { %v2180_v11 = vadd.f32 %v2105_v18, %v3904_v44  ;;  %v2107_v27 = vadd.f32 %v2106_v31, %v1940_v51  ;;  %v2178_v23 = vadd.f32 %v2177_v53, %v2011_v13  ;;  %v2182_v59 = vadd.f32 %v2176_v17, %v3913_v30  ;;  %v2209_v53 = vld [vmem:[%s5108_s0 + $0xe] sm:$0x1]  ;;  %v2212_v18 = vld [vmem:[%s5108_s0 + $0x26] sm:$0x1] }
 0x5e8   :  { %v3036_v35 = vmul.f32 -1.442695, %v2180_v11  ;;  %v2181_v15 = vadd.f32 %v2107_v27, %v3906_v32  ;;  %v2183_v29 = vadd.f32 %v2178_v23, %v3910_v41  ;;  %v2370_v11 = vrot.slane %v2211_v25, 5 }
 0x5ea   :  { %3184 = vpow2.f32 %v3036_v35  ;;  %v3037_v33 = vmul.f32 -1.442695, %v2181_v15  ;;  %v3038_v24 = vmul.f32 -1.442695, %v2183_v29 }
 0x5ec   :  { %3186 = vpow2.f32 %v3037_v33 }
 0x5ed   :  { %3188 = vpow2.f32 %v3038_v24  ;;  %v2366_v24 = vrot.slane %v2209_v53, 7 }
 0x5f7   :  { %v3185_v26 = vpop.eup %3184 }
 0x5f8   :  { %v2187_v22 = vadd.f32 1.0, %v3185_v26  ;;  %v2210_v26 = vld [vmem:[%s5108_s0 + $0x16] sm:$0x1] }
 0x5f9   :  { %v3187_v20 = vpop.eup %3186  ;;  %v2368_v13 = vrot.slane %v2210_v26, 6 }
 0x5fa   :  { %3190 = vrcp.f32 %v2187_v22  ;;  %v2193_v31 = vadd.f32 1.0, %v3187_v20  ;;  %v3189_v27 = vpop.eup %3188  ;;  %v2208_v20 = vld [vmem:[%s5108_s0 + $0x6] sm:$0x1]  ;;  %v2372_v22 = vrot.slane %v2212_v18, 4 }
 0x5fb   :  { %3192 = vtanh.f32 %v2182_v59  ;;  %v2200_v51 = vadd.f32 1.0, %v3189_v27  ;;  %v2213_v59 = vld [vmem:[%s5108_s0 + $0x2e] sm:$0x1]  ;;  %v2214_v27 = vld [vmem:[%s5108_s0 + $0x36] sm:$0x1] }
 0x5fc   :  { %3194 = vrcp.f32 %v2193_v31 }
 0x5fd   :  { %3196 = vrcp.f32 %v2200_v51 }
 0x607   :  { %v3191_v35 = vpop.eup %3190 }
 0x608   :  { %v3193_v33 = vpop.eup %3192 }
 0x609   :  { %v3195_v15 = vpop.eup %3194  ;;  %v2204_v23 = vmul.f32 %v3193_v33, %v3191_v35  ;;  %v2374_v35 = vrot.slane %v2213_v59, 3  ;;  %v2215_v33 = vld [vmem:[%s5108_s0 + $0x3e] sm:$0x1] }
 0x60a   :  { %v2203_v29 = vmul.f32 %v3195_v15, %v4756_v21  ;;  %v2367_v21 = vsel %vm274_vm0, %v2366_v24, %v2208_v20  ;;  %v2376_v15 = vrot.slane %v2214_v27, 2  ;;  %v3197_v51 = vpop.eup %3196  ;;  %v2378_v24 = vrot.slane %v2215_v33, 1 }
 0x60b   :  { %v2369_v37 = vsel %vm277_vm1, %v2368_v13, %v2367_v21  ;;  %v5492_v13 = vld [vmem:[#allocation32_spill] sm:$0xff] }
 0x60c   :  { %v4873_v17 = vadd.f32 %v2204_v23, %v2203_v29  ;;  %v2371_v31 = vsel %vm280_vm2, %v2370_v11, %v2369_v37  ;;  %v5493_v21 = vld [vmem:[#allocation36_spill] sm:$0xff] }
 0x60d   :  { %v2373_v53 = vsel %vm283_vm3, %v2372_v22, %v2371_v31 }
 0x60e   :  { %3198 = vtanh.f32 %v4873_v17  ;;  %v2375_v23 = vsel %vm286_vm4, %v2374_v35, %v2373_v53 }
 0x60f   :  { %v2377_v20 = vsel %vm289_vm5, %v2376_v15, %v2375_v23 }
 0x610   :  { %v2379_v25 = vsel %vm292_vm6, %v2378_v24, %v2377_v20 }
 0x61b   :  { %v3199_v29 = vpop.eup %3198 }
 0x61c   :  { %v2207_v26 = vmul.f32 %v3199_v29, %v3197_v51 }
 0x61e   :  { %2281 = vmatmul.mubr.f32.vlgmr.msra.gmra.mxu0 %v2207_v26  ;;  %2352 = vmatmul.mubr.f32.vlgmr.msra.gmra.mxu1 %v2207_v26 }
 0x61f   :  { %2411 = vmatpush1.msra.mxu0 %v4636_v45  ;;  %2482 = vmatpush1.msra.mxu1 %v4642_v63 }
 0x620   :  { %2412 = vmatprep.subr.mxu0 %v4648_v19  ;;  %2483 = vmatprep.subr.mxu1 %v4654_v4 }
 0x621   :  { %2413 = vmatpush1.msra.mxu0 %v4661_v34  ;;  %2446 = vmatprep.mubr.f32.mxu0 %v5287_v54 }
 0x622   :  { %2484 = vmatpush1.msra.mxu1 %v4668_v61  ;;  %2517 = vmatprep.mubr.f32.mxu1 %v5287_v54 }
 0x623   :  { %3039 = vmatmul.mubr.msk.f32.vlgmr.msra.gmra.mxu0 %vm294_vm7, %v2379_v25  ;;  %3040 = vmatmul.mubr.msk.f32.vlgmr.msra.gmra.mxu1 %vm294_vm7, %v2379_v25 }
 0x624   :  { %2560 = vmatprep.subr.mxu0 %v4148_v56  ;;  %2631 = vmatprep.subr.mxu1 %v4230_v57  ;;  %v5460_v56 = vld [vmem:[#allocation4_spill] sm:$0xff]  ;;  %v5465_v57 = vld [vmem:[#allocation18_spill] sm:$0xff] }
 0x625   :  { %2561 = vmatpush1.msra.mxu0 %v4198_v46  ;;  %2632 = vmatpush1.msra.mxu1 %v4236_v58  ;;  %v5461_v46 = vld [vmem:[#allocation13_spill] sm:$0xff]  ;;  %v5466_v58 = vld [vmem:[#allocation6_spill] sm:$0xff] }
 0x626   :  { %2562 = vmatprep.subr.mxu0 %v4205_v38  ;;  %2633 = vmatprep.subr.mxu1 %v4248_v47  ;;  %v5462_v38 = vld [vmem:[#allocation5_spill] sm:$0xff]  ;;  %v5468_v47 = vld [vmem:[#allocation7_spill] sm:$0xff] }
 0x627   :  { %2563 = vmatpush1.msra.mxu0 %v4216_v50  ;;  %2634 = vmatpush1.msra.mxu1 %v4260_v36  ;;  %v5463_v50 = vld [vmem:[#allocation16_spill] sm:$0xff] }
 0x628   :  { %2564 = vmatprep.subr.mxu0 %v4223_v43  ;;  %2635 = vmatprep.subr.mxu1 %v4272_v49  ;;  %v5464_v43 = vld [vmem:[#allocation11_spill] sm:$0xff]  ;;  %v5470_v36 = vld [vmem:[#allocation8_spill] sm:$0xff]  ;;  %v5472_v49 = vld [vmem:[#allocation9_spill] sm:$0xff] }
 0x629   :  { %2565 = vmatpush1.msra.mxu0 %v4242_v55  ;;  %2636 = vmatpush1.msra.mxu1 %v4284_v60  ;;  %v5467_v55 = vld [vmem:[#allocation20_spill] sm:$0xff]  ;;  %v5474_v60 = vld [vmem:[#allocation10_spill] sm:$0xff] }
 0x62a   :  { %2566 = vmatprep.subr.mxu0 %v4254_v3  ;;  %2637 = vmatprep.subr.mxu1 %v4296_v62  ;;  %v5469_v3 = vld [vmem:[#allocation22_spill] sm:$0xff]  ;;  %v5476_v62 = vld [vmem:[#allocation12_spill] sm:$0xff] }
 0x62b   :  { %2567 = vmatpush1.msra.mxu0 %v4266_v48  ;;  %2638 = vmatpush1.msra.mxu1 %v4308_v28  ;;  %v5471_v48 = vld [vmem:[#allocation24_spill] sm:$0xff]  ;;  %v5478_v28 = vld [vmem:[#allocation14_spill] sm:$0xff] }
 0x62c   :  { %2568 = vmatprep.subr.mxu0 %v4278_v42  ;;  %2639 = vmatprep.subr.mxu1 %v4320_v0  ;;  %v5473_v42 = vld [vmem:[#allocation25_spill] sm:$0xff]  ;;  %v5480_v0 = vld [vmem:[#allocation15_spill] sm:$0xff] }
 0x62d   :  { %2569 = vmatpush1.msra.mxu0 %v4290_v39  ;;  %2640 = vmatpush1.msra.mxu1 %v4332_v2  ;;  %v5475_v39 = vld [vmem:[#allocation27_spill] sm:$0xff]  ;;  %v5482_v2 = vld [vmem:[#allocation17_spill] sm:$0xff] }
 0x62e   :  { %2570 = vmatprep.subr.mxu0 %v4302_v52  ;;  %2641 = vmatprep.subr.mxu1 %v4344_v6  ;;  %v5477_v52 = vld [vmem:[#allocation29_spill] sm:$0xff]  ;;  %v5484_v6 = vld [vmem:[#allocation19_spill] sm:$0xff] }
 0x62f   :  { %2571 = vmatpush1.msra.mxu0 %v4314_v40  ;;  %2642 = vmatpush1.msra.mxu1 %v4356_v8  ;;  %v5479_v40 = vld [vmem:[#allocation31_spill] sm:$0xff]  ;;  %v5486_v8 = vld [vmem:[#allocation21_spill] sm:$0xff] }
 0x630   :  { %2572 = vmatprep.subr.mxu0 %v4326_v1  ;;  %2643 = vmatprep.subr.mxu1 %v4368_v10  ;;  %v5481_v1 = vld [vmem:[#allocation33_spill] sm:$0xff]  ;;  %v5488_v10 = vld [vmem:[#allocation23_spill] sm:$0xff] }
 0x631   :  { %2573 = vmatpush1.msra.mxu0 %v4338_v5  ;;  %2644 = vmatpush1.msra.mxu1 %v4380_v12  ;;  %v5483_v5 = vld [vmem:[#allocation35_spill] sm:$0xff]  ;;  %v5489_v12 = vld [vmem:[#allocation30_spill] sm:$0xff] }
 0x632   :  { %2574 = vmatprep.subr.mxu0 %v4350_v7  ;;  %2645 = vmatprep.subr.mxu1 %v4392_v14  ;;  %v5485_v7 = vld [vmem:[#allocation37_spill] sm:$0xff]  ;;  %v5490_v14 = vld [vmem:[#allocation26_spill] sm:$0xff] }
 0x633   :  { %2575 = vmatpush1.msra.mxu0 %v4362_v9  ;;  %2646 = vmatpush1.msra.mxu1 %v4404_v16  ;;  %v5487_v9 = vld [vmem:[#allocation28_spill] sm:$0xff]  ;;  %v5491_v16 = vld [vmem:[#allocation34_spill] sm:$0xff] }
 0x634   :  { %2576 = vmatprep.subr.mxu0 %v5460_v56  ;;  %2647 = vmatprep.subr.mxu1 %v5461_v46 }
 0x635   :  { %2577 = vmatpush1.msra.mxu0 %v5462_v38  ;;  %2648 = vmatpush1.msra.mxu1 %v5463_v50 }
 0x636   :  { %2578 = vmatprep.subr.mxu0 %v5464_v43  ;;  %2649 = vmatprep.subr.mxu1 %v5465_v57 }
 0x637   :  { %2579 = vmatpush1.msra.mxu0 %v5466_v58  ;;  %2650 = vmatpush1.msra.mxu1 %v5467_v55  ;;  %v2553_v55 = vld [vmem:[%s5108_s0 + $0xf] sm:$0x1] }
 0x638   :  { %2580 = vmatprep.subr.mxu0 %v5468_v47  ;;  %2651 = vmatprep.subr.mxu1 %v5469_v3 }
 0x639   :  { %2581 = vmatpush1.msra.mxu0 %v5470_v36  ;;  %2652 = vmatpush1.msra.mxu1 %v5471_v48 }
 0x63a   :  { %2582 = vmatprep.subr.mxu0 %v5472_v49  ;;  %2653 = vmatprep.subr.mxu1 %v5473_v42  ;;  %v2554_v42 = vld [vmem:[%s5108_s0 + $0x17] sm:$0x1] }
 0x63b   :  { %2583 = vmatpush1.msra.mxu0 %v5474_v60  ;;  %2654 = vmatpush1.msra.mxu1 %v5475_v39  ;;  %v2710_v60 = vrot.slane %v2553_v55, 7  ;;  %v2552_v39 = vld [vmem:[%s5108_s0 + $0x7] sm:$0x1] }
 0x63c   :  { %2584 = vmatprep.subr.mxu0 %v5476_v62  ;;  %2655 = vmatprep.subr.mxu1 %v5477_v52  ;;  %v2555_v52 = vld [vmem:[%s5108_s0 + $0x1f] sm:$0x1] }
 0x63d   :  { %2585 = vmatpush1.msra.mxu0 %v5478_v28  ;;  %2656 = vmatpush1.msra.mxu1 %v5479_v40  ;;  %v2712_v28 = vrot.slane %v2554_v42, 6  ;;  %v2556_v40 = vld [vmem:[%s5108_s0 + $0x27] sm:$0x1] }
 0x63e   :  { %2586 = vmatprep.subr.mxu0 %v5480_v0  ;;  %2657 = vmatprep.subr.mxu1 %v5481_v1  ;;  %v2714_v0 = vrot.slane %v2555_v52, 5 }
 0x63f   :  { %2587 = vmatpush1.msra.mxu0 %v5482_v2  ;;  %2658 = vmatpush1.msra.mxu1 %v5483_v5  ;;  %v2557_v2 = vld [vmem:[%s5108_s0 + $0x2f] sm:$0x1]  ;;  %v2716_v5 = vrot.slane %v2556_v40, 4 }
 0x640   :  { %2588 = vmatprep.subr.mxu0 %v5484_v6  ;;  %2659 = vmatprep.subr.mxu1 %v5485_v7  ;;  %v2558_v7 = vld [vmem:[%s5108_s0 + $0x37] sm:$0x1] }
 0x641   :  { %2589 = vmatpush1.msra.mxu0 %v5486_v8  ;;  %2660 = vmatpush1.msra.mxu1 %v5487_v9  ;;  %v2718_v8 = vrot.slane %v2557_v2, 3 }
 0x642   :  { %2590 = vmatprep.subr.mxu0 %v5488_v10  ;;  %2661 = vmatprep.subr.mxu1 %v5489_v12  ;;  %v2559_v10 = vld [vmem:[%s5108_s0 + $0x3f] sm:$0x1]  ;;  %v2720_v12 = vrot.slane %v2558_v7, 2 }
 0x643   :  { %2591 = vmatpush1.msra.mxu0 %v5490_v14  ;;  %2624 = vmatprep.mubr.f32.mxu0 %v5287_v54 }
 0x644   :  { %2662 = vmatpush1.msra.mxu1 %v5491_v16  ;;  %2695 = vmatprep.mubr.f32.mxu1 %v5287_v54 }
 0x645   :  { %2754 = vmatprep.subr.mxu0 %v5492_v13  ;;  %2825 = vmatprep.subr.mxu1 %v5493_v21 }
 0x6de   :  { %v2282_v18 = vpop.f32.mrf.mxu0  ;;  %v2353_v11 = vpop.f32.mrf.mxu1 }
 0x6e0   :  { %v2284_v37 = vpop.f32.mrf.mxu0  ;;  %v2355_v59 = vpop.f32.mrf.mxu1 }
 0x6e3   :  { %v2448_v22 = vpop.f32.mrf.mxu0  ;;  %v2519_v53 = vpop.f32.mrf.mxu1 }
 0x6e4   :  { %v2449_v31 = vadd.f32 %v2448_v22, %v2282_v18  ;;  %v2520_v20 = vadd.f32 %v2519_v53, %v2353_v11  ;;  %v2722_v18 = vrot.slane %v2559_v10, 1  ;;  %v2911_v22 = vld [vmem:[%s5113_s6 + $0x40] sm:$0xff] }
 0x6e5   :  { %v2450_v27 = vpop.f32.mrf.mxu0  ;;  %v2521_v29 = vpop.f32.mrf.mxu1  ;;  %v2907_v53 = vld [vmem:[%s5113_s6 + $0x20] sm:$0xff] }
 0x6e6   :  { %v2524_v35 = vadd.f32 %v2449_v31, %v3904_v44  ;;  %v2451_v33 = vadd.f32 %v2450_v27, %v2284_v37  ;;  %v2522_v26 = vadd.f32 %v2521_v29, %v2355_v59  ;;  %v2526_v46 = vadd.f32 %v2520_v20, %v3913_v30  ;;  %v2912_v59 = vld [vmem:[%s5113_s6 + $0x48] sm:$0xff]  ;;  %v2910_v31 = vld [vmem:[%s5113_s6 + $0x38] sm:$0xff]  ;;  %v2909_v27 = vld [vmem:[%s5113_s6 + $0x30] sm:$0xff] }
 0x6e8   :  { %v3041_v15 = vmul.f32 -1.442695, %v2524_v35  ;;  %v2525_v51 = vadd.f32 %v2451_v33, %v3906_v32  ;;  %v2527_v24 = vadd.f32 %v2522_v26, %v3910_v41  ;;  %v2908_v35 = vld [vmem:[%s5113_s6 + $0x28] sm:$0xff]  ;;  %v2906_v33 = vld [vmem:[%s5113_s6 + $0x18] sm:$0xff] }
 0x6ea   :  { %3200 = vpow2.f32 %v3041_v15  ;;  %v3042_v23 = vmul.f32 -1.442695, %v2525_v51  ;;  %v3043_v25 = vmul.f32 -1.442695, %v2527_v24  ;;  %v2905_v15 = vld [vmem:[%s5113_s6 + $0x10] sm:$0xff]  ;;  %v2904_v51 = vld [vmem:[%s5113_s6 + $0x8] sm:$0xff] }
 0x6ec   :  { %3202 = vpow2.f32 %v3042_v23  ;;  %v2903_v23 = vld [vmem:[%s5113_s6] sm:$0xff] }
 0x6ed   :  { %3204 = vpow2.f32 %v3043_v25 }
 0x6f7   :  { %v3201_v56 = vpop.eup %3200 }
 0x6f8   :  { %v2531_v38 = vadd.f32 1.0, %v3201_v56 }
 0x6f9   :  { %v3203_v50 = vpop.eup %3202 }
 0x6fa   :  { %3206 = vrcp.f32 %v2531_v38  ;;  %v2537_v43 = vadd.f32 1.0, %v3203_v50  ;;  %v3205_v57 = vpop.eup %3204 }
 0x6fb   :  { %3208 = vtanh.f32 %v2526_v46  ;;  %v2544_v36 = vadd.f32 1.0, %v3205_v57 }
 0x6fc   :  { %3210 = vrcp.f32 %v2537_v43 }
 0x6fd   :  { %3212 = vrcp.f32 %v2544_v36 }
 0x707   :  { %v3207_v58 = vpop.eup %3206 }
 0x708   :  { %v3209_v47 = vpop.eup %3208 }
 0x709   :  { %v3211_v3 = vpop.eup %3210  ;;  %v2548_v48 = vmul.f32 %v3209_v47, %v3207_v58 }
 0x70a   :  { %v2547_v49 = vmul.f32 %v3211_v3, %v4873_v17  ;;  %v2711_v17 = vsel %vm274_vm0, %v2710_v60, %v2552_v39  ;;  %v3213_v14 = vpop.eup %3212 }
 0x70b   :  { %v2713_v1 = vsel %vm277_vm1, %v2712_v28, %v2711_v17 }
 0x70c   :  { %v4990_v62 = vadd.f32 %v2548_v48, %v2547_v49  ;;  %v2715_v6 = vsel %vm280_vm2, %v2714_v0, %v2713_v1 }
 0x70d   :  { %v2717_v9 = vsel %vm283_vm3, %v2716_v5, %v2715_v6  ;;  %v3049_v6 = vld [vmem:[%s5116_s7] ss:$0 sm:$0xff] }
 0x70e   :  { %3214 = vtanh.f32 %v4990_v62  ;;  %v2719_v16 = vsel %vm286_vm4, %v2718_v8, %v2717_v9 }
 0x70f   :  { %v2721_v11 = vsel %vm289_vm5, %v2720_v12, %v2719_v16 }
 0x710   :  { %v2723_v37 = vsel %vm292_vm6, %v2722_v18, %v2721_v11 }
 0x71b   :  { %v3215_v13 = vpop.eup %3214 }
 0x71c   :  { %v2551_v21 = vmul.f32 %v3215_v13, %v3213_v14 }
 0x71e   :  { %2625 = vmatmul.mubr.f32.vlgmr.msra.gmra.mxu0 %v2551_v21  ;;  %2696 = vmatmul.mubr.f32.vlgmr.msra.gmra.mxu1 %v2551_v21 }
 0x71f   :  { %2755 = vmatpush1.msra.mxu0 %v4636_v45  ;;  %2826 = vmatpush1.msra.mxu1 %v4642_v63  ;;  %v2918_v45 = vld [vmem:[%s5113_s6 + $0x78] sm:$0xff]  ;;  %v2917_v63 = vld [vmem:[%s5113_s6 + $0x70] sm:$0xff] }
 0x720   :  { %2756 = vmatprep.subr.mxu0 %v4648_v19  ;;  %2827 = vmatprep.subr.mxu1 %v4654_v4  ;;  %v2916_v19 = vld [vmem:[%s5113_s6 + $0x68] sm:$0xff]  ;;  %v2915_v4 = vld [vmem:[%s5113_s6 + $0x60] sm:$0xff] }
 0x721   :  { %2757 = vmatpush1.msra.mxu0 %v4661_v34  ;;  %2790 = vmatprep.mubr.f32.mxu0 %v5287_v54  ;;  %v2914_v34 = vld [vmem:[%s5113_s6 + $0x58] sm:$0xff] }
 0x722   :  { %2828 = vmatpush1.msra.mxu1 %v4668_v61  ;;  %2861 = vmatprep.mubr.f32.mxu1 %v5287_v54  ;;  %v2913_v61 = vld [vmem:[%s5113_s6 + $0x50] sm:$0xff] }
 0x723   :  { %3044 = vmatmul.mubr.msk.f32.vlgmr.msra.gmra.mxu0 %vm294_vm7, %v2723_v37  ;;  %3045 = vmatmul.mubr.msk.f32.vlgmr.msra.gmra.mxu1 %vm294_vm7, %v2723_v37 }
 0x724   :  { %3067 = vmatprep.subr.mxu0 %v5287_v54  ;;  %3099 = vmatprep.mubr.msk.f32.mxu0 %vm3305_vm8, %v5287_v54 }
 0x725   :  { %3068 = vmatpush3.msra.mxu0 %v2918_v45 }
 0x726   :  { %3069 = vmatprep.subr.mxu0 %v5287_v54 }
 0x727   :  { %3070 = vmatpush3.msra.mxu0 %v2917_v63 }
 0x728   :  { %3071 = vmatprep.subr.mxu0 %v5287_v54 }
 0x729   :  { %3072 = vmatpush3.msra.mxu0 %v2916_v19 }
 0x72a   :  { %3073 = vmatprep.subr.mxu0 %v5287_v54 }
 0x72b   :  { %3074 = vmatpush3.msra.mxu0 %v2915_v4 }
 0x72c   :  { %3075 = vmatprep.subr.mxu0 %v5287_v54 }
 0x72d   :  { %3076 = vmatpush3.msra.mxu0 %v2914_v34 }
 0x72e   :  { %3077 = vmatprep.subr.mxu0 %v5287_v54 }
 0x72f   :  { %3078 = vmatpush3.msra.mxu0 %v2913_v61 }
 0x730   :  { %3079 = vmatprep.subr.mxu0 %v5287_v54 }
 0x731   :  { %3080 = vmatpush3.msra.mxu0 %v2912_v59 }
 0x732   :  { %3081 = vmatprep.subr.mxu0 %v5287_v54 }
 0x733   :  { %3082 = vmatpush3.msra.mxu0 %v2911_v22 }
 0x734   :  { %3083 = vmatprep.subr.mxu0 %v5287_v54 }
 0x735   :  { %3084 = vmatpush3.msra.mxu0 %v2910_v31 }
 0x736   :  { %3085 = vmatprep.subr.mxu0 %v5287_v54 }
 0x737   :  { %3086 = vmatpush3.msra.mxu0 %v2909_v27 }
 0x738   :  { %3087 = vmatprep.subr.mxu0 %v5287_v54 }
 0x739   :  { %3088 = vmatpush3.msra.mxu0 %v2908_v35 }
 0x73a   :  { %3089 = vmatprep.subr.mxu0 %v5287_v54 }
 0x73b   :  { %3090 = vmatpush3.msra.mxu0 %v2907_v53 }
 0x73c   :  { %3091 = vmatprep.subr.mxu0 %v5287_v54 }
 0x73d   :  { %3092 = vmatpush3.msra.mxu0 %v2906_v33 }
 0x73e   :  { %3093 = vmatprep.subr.mxu0 %v5287_v54 }
 0x73f   :  { %3094 = vmatpush3.msra.mxu0 %v2905_v15 }
 0x740   :  { %3095 = vmatprep.subr.mxu0 %v5287_v54 }
 0x741   :  { %3096 = vmatpush3.msra.mxu0 %v2904_v51 }
 0x742   :  { %3097 = vmatprep.subr.mxu0 %v5287_v54 }
 0x743   :  { %3098 = vmatpush3.msra.mxu0 %v2903_v23 }
 0x7de   :  { %v2626_v29 = vpop.f32.mrf.mxu0  ;;  %v2697_v26 = vpop.f32.mrf.mxu1 }
 0x7e0   :  { %v2628_v24 = vpop.f32.mrf.mxu0  ;;  %v2699_v20 = vpop.f32.mrf.mxu1 }
 0x7e3   :  { %v2792_v25 = vpop.f32.mrf.mxu0  ;;  %v2863_v50 = vpop.f32.mrf.mxu1 }
 0x7e4   :  { %v2793_v56 = vadd.f32 %v2792_v25, %v2626_v29  ;;  %v2864_v36 = vadd.f32 %v2863_v50, %v2697_v26 }
 0x7e5   :  { %v2794_v46 = vpop.f32.mrf.mxu0  ;;  %v2865_v47 = vpop.f32.mrf.mxu1 }
 0x7e6   :  { %v2868_v38 = vadd.f32 %v2793_v56, %v3904_v44  ;;  %v2795_v43 = vadd.f32 %v2794_v46, %v2628_v24  ;;  %v2866_v54 = vadd.f32 %v2865_v47, %v2699_v20  ;;  %v2870_v42 = vadd.f32 %v2864_v36, %v3913_v30 }
 0x7e8   :  { %v3046_v57 = vmul.f32 -1.442695, %v2868_v38  ;;  %v2869_v58 = vadd.f32 %v2795_v43, %v3906_v32  ;;  %v2871_v3 = vadd.f32 %v2866_v54, %v3910_v41 }
 0x7ea   :  { %3216 = vpow2.f32 %v3046_v57  ;;  %v3047_v55 = vmul.f32 -1.442695, %v2869_v58  ;;  %v3048_v48 = vmul.f32 -1.442695, %v2871_v3 }
 0x7ec   :  { %3218 = vpow2.f32 %v3047_v55 }
 0x7ed   :  { %3220 = vpow2.f32 %v3048_v48 }
 0x7f7   :  { %v3217_v49 = vpop.eup %3216 }
 0x7f8   :  { %v2875_v60 = vadd.f32 1.0, %v3217_v49 }
 0x7f9   :  { %v3219_v39 = vpop.eup %3218 }
 0x7fa   :  { %3222 = vrcp.f32 %v2875_v60  ;;  %v2881_v44 = vadd.f32 1.0, %v3219_v39  ;;  %v3221_v32 = vpop.eup %3220 }
 0x7fb   :  { %3224 = vtanh.f32 %v2870_v42  ;;  %v2888_v40 = vadd.f32 1.0, %v3221_v32 }
 0x7fc   :  { %3226 = vrcp.f32 %v2881_v44 }
 0x7fd   :  { %3228 = vrcp.f32 %v2888_v40 }
 0x807   :  { %v3223_v52 = vpop.eup %3222 }
 0x808   :  { %v3225_v28 = vpop.eup %3224 }
 0x809   :  { %v3227_v17 = vpop.eup %3226  ;;  %v2892_v0 = vmul.f32 %v3225_v28, %v3223_v52 }
 0x80a   :  { %v2891_v41 = vmul.f32 %v3227_v17, %v4990_v62  ;;  %v3229_v30 = vpop.eup %3228 }
 0x80c   :  { %v2893_v1 = vadd.f32 %v2892_v0, %v2891_v41 }
 0x80e   :  { %3230 = vtanh.f32 %v2893_v1  ;;  %2902 = vst [vmem:[%s5114_s10] sm:$0xff] %v2893_v1 }
 0x81b   :  { %v3231_v2 = vpop.eup %3230 }
 0x81c   :  { %v2895_v5 = vmul.f32 %v3231_v2, %v3229_v30 }
 0x81e   :  { %2901 = vst [vmem:[%s5115_s9] sm:$0xff] %v2895_v5  ;;  %3100 = vmatmul.mubr.f32.vlgmr.msra.gmra.mxu0 %v2895_v5 }
 0x8de   :  { %v2992_v62 = vpop.f32.mrf.mxu0 }
 0x8df   :  { %v2993_v7 = vadd.f32 %v3049_v6, %v2992_v62 }
 0x8e0   :  { %v3101_v8 = vpop.f32.mrf.mxu0 }
 0x8e1   :  { %2996 = vst [vmem:[%s5117_s8] sm:$0xff] %v2993_v7 }

</bundles_post_ra>
